<compile_context>
chip_gen: v7x
topology: tpu7x:2x2x1
jax: 0.10.0
libtpu: 0.0.40
codegen_flags: <defaults>
</compile_context>

<pallas_src>
import functools

import jax
import jax.numpy as jnp
from jax import lax
from jax.experimental import pallas as pl
from jax.experimental.pallas import tpu as pltpu

LANE = 128


def _round_up(x, m):
    return ((x + m - 1) // m) * m


# ----------------------------------------------------------------------------
# Fused Pallas kernel: all GATConv layers (heads=1, negative_slope=0.2)
# ----------------------------------------------------------------------------
def gat_fused_kernel(*refs, num_layers, f_outs, negative_slope=0.2):
    x_ref = refs[0]
    adj_ref = refs[1]                                       # (N, N) int8 edge mask
    w_refs = refs[2:2 + num_layers]                         # bf16 (Fp_prev, Fp)  [W | W@att_dst]
    ws_refs = refs[2 + num_layers:2 + 2 * num_layers]       # bf16 (1, Fp_prev)   W@att_src row
    b_refs = refs[2 + 2 * num_layers:2 + 3 * num_layers]    # f32  (1, Fp)
    out_ref = refs[2 + 3 * num_layers]

    h = x_ref[...]                                          # (N, Fp0) f32 node features

    for l in range(num_layers):
        f_out = f_outs[l]

        h_bf = h.astype(jnp.bfloat16)                       # MXU operand only

        # Projection on the MXU (bf16 x bf16 -> f32 accumulate). Column f_out of
        # the augmented weight carries W@att_dst, so a_dst rides for free.
        hw = jnp.dot(h_bf, w_refs[l][...],
                     preferred_element_type=jnp.float32)    # (N, Fp_l)

        a_dst = hw[:, f_out:f_out + 1]                      # (N, 1)  <h_i, att_dst>

        # a_src as a ROW straight off the MXU: (1, Fp_prev) x (N, Fp_prev)^T.
        # Avoids the (N,1) -> (1,N) cross-lane relayout.
        a_src_row = lax.dot_general(
            ws_refs[l][...], h_bf,
            dimension_numbers=(((1,), (1,)), ((), ())),
            preferred_element_type=jnp.float32)             # (1, N)  <h_j, att_src>

        # e[i, j] = LeakyReLU(a_dst[i] + a_src[j], 0.2)
        e = a_dst + a_src_row                               # (N, N) f32
        e = jnp.maximum(e, negative_slope * e)              # LeakyReLU (slope < 1)

        # Masked softmax over source nodes j. Mask BEFORE exp: the masked
        # logits are reused for the row max and the exp, and non-edges
        # underflow to exactly 0 (no inf*0 NaN hazard). Self loops guarantee a
        # finite row max. Mask read per layer (shorter live range than hoisting
        # the int8 load across the whole unrolled body).
        mask = adj_ref[...].astype(jnp.float32) > 0.0
        e = jnp.where(mask, e, jnp.float32(-1e30))          # (N, N) masked logits
        m = jnp.max(e, axis=-1, keepdims=True)              # (N, 1)
        p = jnp.exp(e - m)                                  # (N, N) f32, non-edges = 0
        s = jnp.sum(p, axis=-1, keepdims=True)              # (N, 1)

        # Aggregate FIRST on the MXU (bf16 operands), then scale by 1/s:
        # scales an (N, Fp) tensor instead of an (N, N) one, and keeps the
        # approx-reciprocal error out of the MXU operand.
        agg = jnp.dot(p.astype(jnp.bfloat16), hw.astype(jnp.bfloat16),
                      preferred_element_type=jnp.float32)   # (N, Fp_l)
        h = agg * pl.reciprocal(s, approx=True) + b_refs[l][...]

        if l < num_layers - 1:
            h = jnp.maximum(h, 0.0)                         # fused inter-layer ReLU
        # TODO(synk): F.dropout(training=True) omitted — inference (eval)
        # semantics, dropout is the identity here.

    out_ref[...] = h.astype(out_ref.dtype)


# ----------------------------------------------------------------------------
# Wrapper: lane-pad, fold att_dst into W, bf16 weights, int8 adj, one pallas_call
# ----------------------------------------------------------------------------
def gat_forward(params, x, adj, dropout_p=0.5):
    del dropout_p  # eval semantics
    n = x.shape[0]
    num_layers = len(params)
    f_ins = tuple(p["w"].shape[0] for p in params)
    f_outs = tuple(p["w"].shape[1] for p in params)

    # Padded widths: room for F_out + 1 attention (att_dst) column, rounded to 128.
    f_in_pad0 = _round_up(f_ins[0], LANE)
    f_pads = tuple(_round_up(f + 1, LANE) for f in f_outs)

    # Lane-pad the input features (kept f32; cast to bf16 inside the kernel).
    x_pad = jnp.zeros((n, f_in_pad0), jnp.float32).at[:, :f_ins[0]].set(x)

    # Build augmented / padded weights and biases. Weights go to bf16 (MXU
    # operands, half the DMA); biases stay f32 (added to the f32 accumulator).
    w_augs, w_srcs, b_pads = [], [], []
    prev_pad = f_in_pad0
    for l, p in enumerate(params):
        f_in, f_out, f_pad = f_ins[l], f_outs[l], f_pads[l]
        w = p["w"].astype(jnp.float32)
        w_aug = jnp.zeros((prev_pad, f_pad), jnp.float32)
        w_aug = w_aug.at[:f_in, :f_out].set(w)
        w_aug = w_aug.at[:f_in, f_out].set(w @ p["att_dst"].reshape(-1))
        w_src = jnp.zeros((1, prev_pad), jnp.float32)
        w_src = w_src.at[0, :f_in].set(w @ p["att_src"].reshape(-1))
        b_pad = jnp.zeros((1, f_pad), jnp.float32).at[:, :f_out].set(p["bias"])
        w_augs.append(w_aug.astype(jnp.bfloat16))
        w_srcs.append(w_src.astype(jnp.bfloat16))
        b_pads.append(b_pad)
        prev_pad = f_pad

    kernel = functools.partial(gat_fused_kernel,
                               num_layers=num_layers, f_outs=f_outs)
    vmem = pl.BlockSpec(memory_space=pltpu.MemorySpace.VMEM)
    out_pad = pl.pallas_call(
        kernel,
        out_shape=jax.ShapeDtypeStruct((n, f_pads[-1]), jnp.float32),
        in_specs=[vmem] * (2 + 3 * num_layers),
        out_specs=vmem,
    )(x_pad, adj.astype(jnp.int8), *w_augs, *w_srcs, *b_pads)

    # Strip lane padding (and the attention column) of the final layer.
    return out_pad[:, :f_outs[-1]]


# ----------------------------------------------------------------------------
# Parameter init (matches PyG GATConv heads=1 parameterization)
# ----------------------------------------------------------------------------
def glorot(key, shape):
    fan_in, fan_out = shape[-2], shape[-1]
    limit = (6.0 / (fan_in + fan_out)) ** 0.5
    return jax.random.uniform(key, shape, jnp.float32, -limit, limit)


def init_gat_params(key, in_channels, hidden_channels, out_channels, num_layers):
    dims = [in_channels] + [hidden_channels] * (num_layers - 1) + [out_channels]
    params = []
    for l in range(num_layers):
        f_in, f_out = dims[l], dims[l + 1]
        key, kw, ks, kd = jax.random.split(key, 4)
        params.append(dict(
            w=glorot(kw, (f_in, f_out)),        # lin weight
            att_src=glorot(ks, (1, f_out)),     # attention vector (source)
            att_dst=glorot(kd, (1, f_out)),     # attention vector (target)
            bias=jnp.zeros((1, f_out), jnp.float32),
        ))
    return params


# ----------------------------------------------------------------------------
if __name__ == "__main__":
    N = 128                 # number of nodes
    IN_CH, HID_CH, OUT_CH = 16, 32, 8
    NUM_LAYERS = 3
    DROPOUT = 0.5

    key = jax.random.PRNGKey(0)
    k_x, k_adj, k_params = jax.random.split(key, 3)

    # Node features
    x = jax.random.normal(k_x, (N, IN_CH), jnp.float32)

    # Dense adjacency (adj[i, j] = 1 means edge j -> i) with self loops.
    adj = jax.random.bernoulli(k_adj, 0.1, (N, N)).astype(jnp.float32)
    adj = jnp.maximum(adj, jnp.eye(N, dtype=jnp.float32))

    params = init_gat_params(k_params, IN_CH, HID_CH, OUT_CH, NUM_LAYERS)

    out = gat_forward(params, x, adj, DROPOUT)
    out = jax.block_until_ready(out)
    assert out.shape == (N, OUT_CH), out.shape
    assert bool(jnp.all(jnp.isfinite(out)))
    print("KERNEL_OK")
</pallas_src>

<mosaic_0001>
module attributes {stable_mosaic.version = 11 : i64} {
  func.func @gat_fused_kernel(%arg0: memref<128x128xf32, #tpu.memory_space<vmem>>, %arg1: memref<128x128xi8, #tpu.memory_space<vmem>>, %arg2: memref<128x128xbf16, #tpu.memory_space<vmem>>, %arg3: memref<128x128xbf16, #tpu.memory_space<vmem>>, %arg4: memref<128x128xbf16, #tpu.memory_space<vmem>>, %arg5: memref<1x128xbf16, #tpu.memory_space<vmem>>, %arg6: memref<1x128xbf16, #tpu.memory_space<vmem>>, %arg7: memref<1x128xbf16, #tpu.memory_space<vmem>>, %arg8: memref<1x128xf32, #tpu.memory_space<vmem>>, %arg9: memref<1x128xf32, #tpu.memory_space<vmem>>, %arg10: memref<1x128xf32, #tpu.memory_space<vmem>>, %arg11: memref<128x128xf32, #tpu.memory_space<vmem>>) attributes {dimension_semantics = [], scalar_prefetch = 0 : i64, scratch_operands = 0 : i64, tpu.core_type = #tpu.core_type<tc>} {
    %c0 = arith.constant 0 : index
    %c0_0 = arith.constant 0 : index
    %0 = vector.load %arg0[%c0, %c0_0] : memref<128x128xf32, #tpu.memory_space<vmem>>, vector<128x128xf32>
    %1 = arith.truncf %0 : vector<128x128xf32> to vector<128x128xbf16>
    %c0_1 = arith.constant 0 : index
    %c0_2 = arith.constant 0 : index
    %2 = vector.load %arg2[%c0_1, %c0_2] : memref<128x128xbf16, #tpu.memory_space<vmem>>, vector<128x128xbf16>
    %cst = arith.constant dense<0.000000e+00> : vector<128x128xf32>
    %3 = tpu.matmul %1, %2, %cst {dimension_numbers = #tpu.dot_dimension_numbers<[1], [0], [0], [1], [0, 0, 1, 1], [], []>} : vector<128x128xbf16>, vector<128x128xbf16>, vector<128x128xf32> -> vector<128x128xf32>
    %4 = vector.extract_strided_slice %3 {offsets = [0, 32], sizes = [128, 1], strides = [1, 1]} : vector<128x128xf32> to vector<128x1xf32>
    %c0_3 = arith.constant 0 : index
    %c0_4 = arith.constant 0 : index
    %5 = vector.load %arg5[%c0_3, %c0_4] : memref<1x128xbf16, #tpu.memory_space<vmem>>, vector<1x128xbf16>
    %cst_5 = arith.constant dense<0.000000e+00> : vector<1x128xf32>
    %6 = tpu.matmul %5, %1, %cst_5 {dimension_numbers = #tpu.dot_dimension_numbers<[1], [1], [0], [0], [0, 0, 1, 0], [], []>} : vector<1x128xbf16>, vector<128x128xbf16>, vector<1x128xf32> -> vector<1x128xf32>
    %7 = vector.broadcast %4 : vector<128x1xf32> to vector<128x128xf32>
    %8 = vector.broadcast %6 : vector<1x128xf32> to vector<128x128xf32>
    %9 = arith.addf %7, %8 : vector<128x128xf32>
    %cst_6 = arith.constant 2.000000e-01 : f32
    %10 = vector.broadcast %cst_6 : f32 to vector<128x128xf32>
    %11 = arith.mulf %10, %9 : vector<128x128xf32>
    %12 = arith.maximumf %9, %11 : vector<128x128xf32>
    %c0_7 = arith.constant 0 : index
    %c0_8 = arith.constant 0 : index
    %13 = vector.load %arg1[%c0_7, %c0_8] : memref<128x128xi8, #tpu.memory_space<vmem>>, vector<128x128xi8>
    %14 = arith.sitofp %13 : vector<128x128xi8> to vector<128x128xf32>
    %cst_9 = arith.constant 0.000000e+00 : f32
    %15 = vector.broadcast %cst_9 : f32 to vector<128x128xf32>
    %16 = arith.cmpf ogt, %14, %15 : vector<128x128xf32>
    %cst_10 = arith.constant -1.000000e+30 : f32
    %17 = vector.broadcast %cst_10 : f32 to vector<128x128xf32>
    %18 = arith.select %16, %12, %17 : vector<128x128xi1>, vector<128x128xf32>
    %cst_11 = arith.constant dense<0xFF800000> : vector<128xf32>
    %19 = vector.multi_reduction <maximumf>, %18, %cst_11 [1] : vector<128x128xf32> to vector<128xf32>
    %20 = vector.shape_cast %19 : vector<128xf32> to vector<128x1xf32>
    %21 = vector.broadcast %20 : vector<128x1xf32> to vector<128x128xf32>
    %22 = arith.subf %18, %21 : vector<128x128xf32>
    %23 = math.exp %22 : vector<128x128xf32>
    %cst_12 = arith.constant dense<0.000000e+00> : vector<128xf32>
    %24 = vector.multi_reduction <add>, %23, %cst_12 [1] : vector<128x128xf32> to vector<128xf32>
    %25 = vector.shape_cast %24 : vector<128xf32> to vector<128x1xf32>
    %26 = arith.truncf %23 : vector<128x128xf32> to vector<128x128xbf16>
    %27 = arith.truncf %3 : vector<128x128xf32> to vector<128x128xbf16>
    %cst_13 = arith.constant dense<0.000000e+00> : vector<128x128xf32>
    %28 = tpu.matmul %26, %27, %cst_13 {dimension_numbers = #tpu.dot_dimension_numbers<[1], [0], [0], [1], [0, 0, 1, 1], [], []>} : vector<128x128xbf16>, vector<128x128xbf16>, vector<128x128xf32> -> vector<128x128xf32>
    %29 = tpu.reciprocal %25 {approx = true} : vector<128x1xf32> -> vector<128x1xf32>
    %30 = vector.broadcast %29 : vector<128x1xf32> to vector<128x128xf32>
    %31 = arith.mulf %28, %30 : vector<128x128xf32>
    %c0_14 = arith.constant 0 : index
    %c0_15 = arith.constant 0 : index
    %32 = vector.load %arg8[%c0_14, %c0_15] : memref<1x128xf32, #tpu.memory_space<vmem>>, vector<1x128xf32>
    %33 = vector.broadcast %32 : vector<1x128xf32> to vector<128x128xf32>
    %34 = arith.addf %31, %33 : vector<128x128xf32>
    %cst_16 = arith.constant 0.000000e+00 : f32
    %35 = vector.broadcast %cst_16 : f32 to vector<128x128xf32>
    %36 = arith.maximumf %34, %35 : vector<128x128xf32>
    %37 = arith.truncf %36 : vector<128x128xf32> to vector<128x128xbf16>
    %c0_17 = arith.constant 0 : index
    %c0_18 = arith.constant 0 : index
    %38 = vector.load %arg3[%c0_17, %c0_18] : memref<128x128xbf16, #tpu.memory_space<vmem>>, vector<128x128xbf16>
    %cst_19 = arith.constant dense<0.000000e+00> : vector<128x128xf32>
    %39 = tpu.matmul %37, %38, %cst_19 {dimension_numbers = #tpu.dot_dimension_numbers<[1], [0], [0], [1], [0, 0, 1, 1], [], []>} : vector<128x128xbf16>, vector<128x128xbf16>, vector<128x128xf32> -> vector<128x128xf32>
    %40 = vector.extract_strided_slice %39 {offsets = [0, 32], sizes = [128, 1], strides = [1, 1]} : vector<128x128xf32> to vector<128x1xf32>
    %c0_20 = arith.constant 0 : index
    %c0_21 = arith.constant 0 : index
    %41 = vector.load %arg6[%c0_20, %c0_21] : memref<1x128xbf16, #tpu.memory_space<vmem>>, vector<1x128xbf16>
    %cst_22 = arith.constant dense<0.000000e+00> : vector<1x128xf32>
    %42 = tpu.matmul %41, %37, %cst_22 {dimension_numbers = #tpu.dot_dimension_numbers<[1], [1], [0], [0], [0, 0, 1, 0], [], []>} : vector<1x128xbf16>, vector<128x128xbf16>, vector<1x128xf32> -> vector<1x128xf32>
    %43 = vector.broadcast %40 : vector<128x1xf32> to vector<128x128xf32>
    %44 = vector.broadcast %42 : vector<1x128xf32> to vector<128x128xf32>
    %45 = arith.addf %43, %44 : vector<128x128xf32>
    %cst_23 = arith.constant 2.000000e-01 : f32
    %46 = vector.broadcast %cst_23 : f32 to vector<128x128xf32>
    %47 = arith.mulf %46, %45 : vector<128x128xf32>
    %48 = arith.maximumf %45, %47 : vector<128x128xf32>
    %c0_24 = arith.constant 0 : index
    %c0_25 = arith.constant 0 : index
    %49 = vector.load %arg1[%c0_24, %c0_25] : memref<128x128xi8, #tpu.memory_space<vmem>>, vector<128x128xi8>
    %50 = arith.sitofp %49 : vector<128x128xi8> to vector<128x128xf32>
    %cst_26 = arith.constant 0.000000e+00 : f32
    %51 = vector.broadcast %cst_26 : f32 to vector<128x128xf32>
    %52 = arith.cmpf ogt, %50, %51 : vector<128x128xf32>
    %cst_27 = arith.constant -1.000000e+30 : f32
    %53 = vector.broadcast %cst_27 : f32 to vector<128x128xf32>
    %54 = arith.select %52, %48, %53 : vector<128x128xi1>, vector<128x128xf32>
    %cst_28 = arith.constant dense<0xFF800000> : vector<128xf32>
    %55 = vector.multi_reduction <maximumf>, %54, %cst_28 [1] : vector<128x128xf32> to vector<128xf32>
    %56 = vector.shape_cast %55 : vector<128xf32> to vector<128x1xf32>
    %57 = vector.broadcast %56 : vector<128x1xf32> to vector<128x128xf32>
    %58 = arith.subf %54, %57 : vector<128x128xf32>
    %59 = math.exp %58 : vector<128x128xf32>
    %cst_29 = arith.constant dense<0.000000e+00> : vector<128xf32>
    %60 = vector.multi_reduction <add>, %59, %cst_29 [1] : vector<128x128xf32> to vector<128xf32>
    %61 = vector.shape_cast %60 : vector<128xf32> to vector<128x1xf32>
    %62 = arith.truncf %59 : vector<128x128xf32> to vector<128x128xbf16>
    %63 = arith.truncf %39 : vector<128x128xf32> to vector<128x128xbf16>
    %cst_30 = arith.constant dense<0.000000e+00> : vector<128x128xf32>
    %64 = tpu.matmul %62, %63, %cst_30 {dimension_numbers = #tpu.dot_dimension_numbers<[1], [0], [0], [1], [0, 0, 1, 1], [], []>} : vector<128x128xbf16>, vector<128x128xbf16>, vector<128x128xf32> -> vector<128x128xf32>
    %65 = tpu.reciprocal %61 {approx = true} : vector<128x1xf32> -> vector<128x1xf32>
    %66 = vector.broadcast %65 : vector<128x1xf32> to vector<128x128xf32>
    %67 = arith.mulf %64, %66 : vector<128x128xf32>
    %c0_31 = arith.constant 0 : index
    %c0_32 = arith.constant 0 : index
    %68 = vector.load %arg9[%c0_31, %c0_32] : memref<1x128xf32, #tpu.memory_space<vmem>>, vector<1x128xf32>
    %69 = vector.broadcast %68 : vector<1x128xf32> to vector<128x128xf32>
    %70 = arith.addf %67, %69 : vector<128x128xf32>
    %cst_33 = arith.constant 0.000000e+00 : f32
    %71 = vector.broadcast %cst_33 : f32 to vector<128x128xf32>
    %72 = arith.maximumf %70, %71 : vector<128x128xf32>
    %73 = arith.truncf %72 : vector<128x128xf32> to vector<128x128xbf16>
    %c0_34 = arith.constant 0 : index
    %c0_35 = arith.constant 0 : index
    %74 = vector.load %arg4[%c0_34, %c0_35] : memref<128x128xbf16, #tpu.memory_space<vmem>>, vector<128x128xbf16>
    %cst_36 = arith.constant dense<0.000000e+00> : vector<128x128xf32>
    %75 = tpu.matmul %73, %74, %cst_36 {dimension_numbers = #tpu.dot_dimension_numbers<[1], [0], [0], [1], [0, 0, 1, 1], [], []>} : vector<128x128xbf16>, vector<128x128xbf16>, vector<128x128xf32> -> vector<128x128xf32>
    %76 = vector.extract_strided_slice %75 {offsets = [0, 8], sizes = [128, 1], strides = [1, 1]} : vector<128x128xf32> to vector<128x1xf32>
    %c0_37 = arith.constant 0 : index
    %c0_38 = arith.constant 0 : index
    %77 = vector.load %arg7[%c0_37, %c0_38] : memref<1x128xbf16, #tpu.memory_space<vmem>>, vector<1x128xbf16>
    %cst_39 = arith.constant dense<0.000000e+00> : vector<1x128xf32>
    %78 = tpu.matmul %77, %73, %cst_39 {dimension_numbers = #tpu.dot_dimension_numbers<[1], [1], [0], [0], [0, 0, 1, 0], [], []>} : vector<1x128xbf16>, vector<128x128xbf16>, vector<1x128xf32> -> vector<1x128xf32>
    %79 = vector.broadcast %76 : vector<128x1xf32> to vector<128x128xf32>
    %80 = vector.broadcast %78 : vector<1x128xf32> to vector<128x128xf32>
    %81 = arith.addf %79, %80 : vector<128x128xf32>
    %cst_40 = arith.constant 2.000000e-01 : f32
    %82 = vector.broadcast %cst_40 : f32 to vector<128x128xf32>
    %83 = arith.mulf %82, %81 : vector<128x128xf32>
    %84 = arith.maximumf %81, %83 : vector<128x128xf32>
    %c0_41 = arith.constant 0 : index
    %c0_42 = arith.constant 0 : index
    %85 = vector.load %arg1[%c0_41, %c0_42] : memref<128x128xi8, #tpu.memory_space<vmem>>, vector<128x128xi8>
    %86 = arith.sitofp %85 : vector<128x128xi8> to vector<128x128xf32>
    %cst_43 = arith.constant 0.000000e+00 : f32
    %87 = vector.broadcast %cst_43 : f32 to vector<128x128xf32>
    %88 = arith.cmpf ogt, %86, %87 : vector<128x128xf32>
    %cst_44 = arith.constant -1.000000e+30 : f32
    %89 = vector.broadcast %cst_44 : f32 to vector<128x128xf32>
    %90 = arith.select %88, %84, %89 : vector<128x128xi1>, vector<128x128xf32>
    %cst_45 = arith.constant dense<0xFF800000> : vector<128xf32>
    %91 = vector.multi_reduction <maximumf>, %90, %cst_45 [1] : vector<128x128xf32> to vector<128xf32>
    %92 = vector.shape_cast %91 : vector<128xf32> to vector<128x1xf32>
    %93 = vector.broadcast %92 : vector<128x1xf32> to vector<128x128xf32>
    %94 = arith.subf %90, %93 : vector<128x128xf32>
    %95 = math.exp %94 : vector<128x128xf32>
    %cst_46 = arith.constant dense<0.000000e+00> : vector<128xf32>
    %96 = vector.multi_reduction <add>, %95, %cst_46 [1] : vector<128x128xf32> to vector<128xf32>
    %97 = vector.shape_cast %96 : vector<128xf32> to vector<128x1xf32>
    %98 = arith.truncf %95 : vector<128x128xf32> to vector<128x128xbf16>
    %99 = arith.truncf %75 : vector<128x128xf32> to vector<128x128xbf16>
    %cst_47 = arith.constant dense<0.000000e+00> : vector<128x128xf32>
    %100 = tpu.matmul %98, %99, %cst_47 {dimension_numbers = #tpu.dot_dimension_numbers<[1], [0], [0], [1], [0, 0, 1, 1], [], []>} : vector<128x128xbf16>, vector<128x128xbf16>, vector<128x128xf32> -> vector<128x128xf32>
    %101 = tpu.reciprocal %97 {approx = true} : vector<128x1xf32> -> vector<128x1xf32>
    %102 = vector.broadcast %101 : vector<128x1xf32> to vector<128x128xf32>
    %103 = arith.mulf %100, %102 : vector<128x128xf32>
    %c0_48 = arith.constant 0 : index
    %c0_49 = arith.constant 0 : index
    %104 = vector.load %arg10[%c0_48, %c0_49] : memref<1x128xf32, #tpu.memory_space<vmem>>, vector<1x128xf32>
    %105 = vector.broadcast %104 : vector<1x128xf32> to vector<128x128xf32>
    %106 = arith.addf %103, %105 : vector<128x128xf32>
    %c0_50 = arith.constant 0 : index
    %c0_51 = arith.constant 0 : index
    %107 = vector.load %arg11[%c0_50, %c0_51] : memref<128x128xf32, #tpu.memory_space<vmem>>, vector<128x128xf32>
    tpu.vector_store %arg11[%c0_50, %c0_51], %106 {strides = array<i32>} : memref<128x128xf32, #tpu.memory_space<vmem>>, vector<128x128xf32>,
    return
  }
}

</mosaic_0001>

<bundles_post_ra>
// kernel: tpu_custom_call.1
= control target key start
LH: loop header
LB: loop body
LE: loop exit
PB: predicated region body
PF: predicated region fallthrough
CT: control target
= control target key end

     0   :  { %16 = vsyncpa [#allocation3], 0  ;;  %s3600_s0 = inlined_call_operand.hbm [shape: f32[128,128], index: 0, kind: input, shape index: {}]   ;;  %s3601_s1 = inlined_call_operand.hbm [shape: s8[128,128], index: 1, kind: input, shape index: {}]   ;;  %s3602_s2 = inlined_call_operand.hbm [shape: bf16[128,128], index: 2, kind: input, shape index: {}]   ;;  %s3603_s3 = inlined_call_operand.hbm [shape: bf16[128,128], index: 3, kind: input, shape index: {}]   ;;  %s3604_s4 = inlined_call_operand.hbm [shape: bf16[128,128], index: 4, kind: input, shape index: {}]   ;;  %s3605_s5 = inlined_call_operand.vmem [shape: bf16[1,128], index: 5, kind: input, shape index: {}]   ;;  %s3606_s6 = inlined_call_operand.vmem [shape: bf16[1,128], index: 6, kind: input, shape index: {}]   ;;  %s3607_s7 = inlined_call_operand.vmem [shape: bf16[1,128], index: 7, kind: input, shape index: {}]   ;;  %s3608_s8 = inlined_call_operand.vmem [shape: f32[1,128], index: 8, kind: input, shape index: {}]   ;;  %s3609_s9 = inlined_call_operand.vmem [shape: f32[1,128], index: 9, kind: input, shape index: {}]   ;;  %s3610_s10 = inlined_call_operand.vmem [shape: f32[1,128], index: 10, kind: input, shape index: {}]   ;;  %s3611_s11 = inlined_call_operand.hbm [shape: f32[128,128], index: 11, kind: output, shape index: {}]  }
   0x1   :  { %17 = vsyncpa [#allocation6], 0 }
   0x2   :  { %18 = vsyncpa [#allocation9], 0 }
   0x3   :  { %19 = vsyncpa [#allocation4], 0  ;;  %s2933_s17 = smov [#allocation5]   ;;  %s2793_s21 = scalar_lea.hbm %s3601_s1, 512 }
   0x4   :  { %s37_s18 = sshll.u32 %s2933_s17, 4  ;;  %p2794_p0 = scmp.ne.s32.totalorder %s3601_s1, %s2793_s21  ;;  %s38_s18 = int_to_ptr.vmem [resolvable:$true] %s37_s18 }
   0x5   :  { %p2797_p1 = scmp.lt.u32.totalorder %s2793_s21, %s3601_s1 }
   0x7   :  { %p2799_p2 = pnand %p2797_p1, %p2794_p0 }
   0x9   :  { %2802 = shalt.err (!%p2799_p2)
}
   0xa   :  { %s2803_s26 = scalar_lea.vmem %s38_s18, 512  ;;  %p2808_p4 = scmp.lt.s32.totalorder %s38_s18, %s38_s18 }
   0xb   :  { %p2804_p3 = scmp.ne.s32.totalorder %s38_s18, %s2803_s26  ;;  %p2809_p5 = scmp.lt.s32.totalorder %s2803_s26, %s2803_s26 }
   0xd   :  { %p2810_p6 = por %p2809_p5, %p2808_p4 }
   0xf   :  { %p2811_p7 = pnand %p2810_p6, %p2804_p3 }
  0x11   :  { %2814 = shalt.err (!%p2811_p7)
}
  0x12   :  { %s2934_s27 = smov 128   ;;  %s2935_s28 = smov 8  }
  0x13   :  { %43 = dma.hbm_to_vmem [thread:$0]  %s3601_s1, 512, %s38_s18, [#allocation6], %s2934_s27, %s2934_s27, %s2935_s28  }
  0x14   :  { %s2936_s12 = smov [#allocation8]   ;;  %s2937_s14 = smov [#allocation2]  }
  0x15   :  { %s61_s13 = sshll.u32 %s2936_s12, 4  ;;  %s25_s15 = sshll.u32 %s2937_s14, 4  ;;  %s62_s13 = int_to_ptr.vmem [resolvable:$true] %s61_s13  ;;  %s26_s15 = int_to_ptr.vmem [resolvable:$true] %s25_s15 }
  0x16   :  { %s2815_s19 = scalar_lea.hbm %s3603_s3, 1024 }
  0x17   :  { %p2816_p8 = scmp.ne.s32.totalorder %s3603_s3, %s2815_s19  ;;  %p2819_p9 = scmp.lt.u32.totalorder %s2815_s19, %s3603_s3 }
  0x19   :  { %p2821_p10 = pnand %p2819_p9, %p2816_p8 }
  0x1b   :  { %2824 = shalt.err (!%p2821_p10)
}
  0x1c   :  { %s2825_s1 = scalar_lea.vmem %s62_s13, 1024  ;;  %p2830_p12 = scmp.lt.s32.totalorder %s62_s13, %s62_s13 }
  0x1d   :  { %p2826_p11 = scmp.ne.s32.totalorder %s62_s13, %s2825_s1  ;;  %p2831_p13 = scmp.lt.s32.totalorder %s2825_s1, %s2825_s1 }
  0x1f   :  { %p2832_p0 = por %p2831_p13, %p2830_p12 }
  0x21   :  { %p2833_p1 = pnand %p2832_p0, %p2826_p11 }
  0x23   :  { %2836 = shalt.err (!%p2833_p1)
}
  0x24   :  { %s2938_s18 = smov 64   ;;  %s2939_s24 = smov 4  }
  0x25   :  { %67 = dma.hbm_to_vmem [thread:$0]  %s3603_s3, 1024, %s62_s13, [#allocation9], %s2938_s18, %s2938_s18, %s2939_s24  }
  0x26   :  { %s2837_s12 = scalar_lea.hbm %s3600_s0, 2048 }
  0x27   :  { %p2838_p2 = scmp.ne.s32.totalorder %s3600_s0, %s2837_s12  ;;  %p2841_p3 = scmp.lt.u32.totalorder %s2837_s12, %s3600_s0 }
  0x29   :  { %p2843_p4 = pnand %p2841_p3, %p2838_p2 }
  0x2b   :  { %2846 = shalt.err (!%p2843_p4)
}
  0x2c   :  { %s2847_s20 = scalar_lea.vmem %s26_s15, 2048  ;;  %p2852_p6 = scmp.lt.s32.totalorder %s26_s15, %s26_s15 }
  0x2d   :  { %p2848_p5 = scmp.ne.s32.totalorder %s26_s15, %s2847_s20  ;;  %p2853_p7 = scmp.lt.s32.totalorder %s2847_s20, %s2847_s20 }
  0x2f   :  { %p2854_p8 = por %p2853_p7, %p2852_p6 }
  0x31   :  { %p2855_p9 = pnand %p2854_p8, %p2848_p5 }
  0x33   :  { %2858 = shalt.err (!%p2855_p9)
}
  0x34   :  { %31 = dma.hbm_to_vmem [thread:$0]  %s3600_s0, 2048, %s26_s15, [#allocation3], %s2934_s27, %s2934_s27, %s2935_s28  }
  0x35   :  { %s2940_s21 = smov [#allocation7]   ;;  %s2941_s23 = smov [#allocation10]  }
  0x36   :  { %s49_s22 = sshll.u32 %s2940_s21, 4  ;;  %s73_s1 = sshll.u32 %s2941_s23, 4  ;;  %s50_s22 = int_to_ptr.vmem [resolvable:$true] %s49_s22  ;;  %s74_s1 = int_to_ptr.vmem [resolvable:$true] %s73_s1 }
  0x37   :  { %s2859_s29 = scalar_lea.hbm %s3602_s2, 1024 }
  0x38   :  { %p2860_p10 = scmp.ne.s32.totalorder %s3602_s2, %s2859_s29  ;;  %p2863_p11 = scmp.lt.u32.totalorder %s2859_s29, %s3602_s2 }
  0x3a   :  { %p2865_p12 = pnand %p2863_p11, %p2860_p10 }
  0x3c   :  { %2868 = shalt.err (!%p2865_p12)
}
  0x3d   :  { %s2869_s0 = scalar_lea.vmem %s50_s22, 1024  ;;  %p2874_p0 = scmp.lt.s32.totalorder %s50_s22, %s50_s22 }
  0x3e   :  { %p2870_p13 = scmp.ne.s32.totalorder %s50_s22, %s2869_s0  ;;  %p2875_p1 = scmp.lt.s32.totalorder %s2869_s0, %s2869_s0 }
  0x40   :  { %p2876_p2 = por %p2875_p1, %p2874_p0 }
  0x42   :  { %p2877_p3 = pnand %p2876_p2, %p2870_p13 }
  0x44   :  { %2880 = shalt.err (!%p2877_p3)
}
  0x45   :  { %55 = dma.hbm_to_vmem [thread:$0]  %s3602_s2, 1024, %s50_s22, [#allocation6], %s2938_s18, %s2938_s18, %s2939_s24  }
  0x46   :  { %s2881_s3 = scalar_lea.hbm %s3604_s4, 1024 }
  0x47   :  { %p2882_p4 = scmp.ne.s32.totalorder %s3604_s4, %s2881_s3  ;;  %p2885_p5 = scmp.lt.u32.totalorder %s2881_s3, %s3604_s4 }
  0x49   :  { %p2887_p6 = pnand %p2885_p5, %p2882_p4 }
  0x4b   :  { %2890 = shalt.err (!%p2887_p6)
}
  0x4c   :  { %s2891_s26 = scalar_lea.vmem %s74_s1, 1024  ;;  %p2896_p8 = scmp.lt.s32.totalorder %s74_s1, %s74_s1 }
  0x4d   :  { %p2892_p7 = scmp.ne.s32.totalorder %s74_s1, %s2891_s26  ;;  %p2897_p9 = scmp.lt.s32.totalorder %s2891_s26, %s2891_s26 }
  0x4f   :  { %p2898_p10 = por %p2897_p9, %p2896_p8 }
  0x51   :  { %p2899_p11 = pnand %p2898_p10, %p2892_p7 }
  0x53   :  { %2902 = shalt.err (!%p2899_p11)
}
  0x54   :  { %79 = dma.hbm_to_vmem [thread:$0]  %s3604_s4, 1024, %s74_s1, [#allocation9], %s2938_s18, %s2938_s18, %s2939_s24  }
  0x55   :  { %2925 = dma.done.wait [#allocation3], 2048  }
  0x56   :  { %2926 = vsyncadd [#allocation3], 4294965248 }
  0x57   :  { %2927 = dma.done.wait [#allocation6], 1536  }
  0x58   :  { %2928 = vsyncadd [#allocation6], 4294965760 }
  0x59   :  { %2929 = dma.done.wait [#allocation9], 2048  }
  0x5a   :  { %2930 = vsyncadd [#allocation9], 4294965248  ;;  %v2942_v0 = vmov 0.0   ;;  %vm2943_vm0 = vmmov 0   ;;  %v2944_v1 = vmov 32   ;;  %v2577_v2 = vld [vmem:[#allocation7] sm:$0xff]   ;;  %v414_v63 = vlaneseq }
  0x5b   :  { %2339 = vmatprep.subr.bf16.mxu1 %v2942_v0  ;;  %2355 = vmatprep.mubr.msk.bf16.mxu1 %vm2943_vm0, %v2942_v0  ;;  %v2578_v3 = vld [vmem:[#allocation7 + $0x8] sm:$0xff]   ;;  %v2579_v4 = vld [vmem:[#allocation7 + $0x10] sm:$0xff]   ;;  %v2580_v5 = vld [vmem:[#allocation7 + $0x18] sm:$0xff]  }
  0x5c   :  { %2574 = vset.pattern.permute.xlu1 %v2944_v1  ;;  %2573 = vset.pattern.permute.xlu0 %v2944_v1  ;;  %v108_v6 = vld [vmem:[#allocation2] sm:$0xff]  ;;  %v109_v7 = vld [vmem:[#allocation2 + $0x8] sm:$0xff]  ;;  %v110_v10 = vld [vmem:[#allocation2 + $0x10] sm:$0xff]  ;;  %v415_v1 = vshrl.u32 %v414_v63, 7 }
  0x5d   :  { %2307 = vmatprep.subr.bf16.mxu0 %v2577_v2  ;;  %v124_v8 = vpack.c.bf16 %v109_v7, %v108_v6  ;;  %v2581_v9 = vld [vmem:[#allocation7 + $0x20] sm:$0xff]   ;;  %v111_v11 = vld [vmem:[#allocation2 + $0x18] sm:$0xff]  ;;  %v2582_v12 = vld [vmem:[#allocation7 + $0x28] sm:$0xff]  }
  0x5e   :  { %2308 = vmatpush3.bf16.msra.mxu0 %v2577_v2  ;;  %v2583_v13 = vld [vmem:[#allocation7 + $0x30] sm:$0xff]   ;;  %v125_v14 = vpack.c.bf16 %v111_v11, %v110_v10  ;;  %v112_v15 = vld [vmem:[#allocation2 + $0x20] sm:$0xff]  ;;  %v113_v16 = vld [vmem:[#allocation2 + $0x28] sm:$0xff]  ;;  %v3098_v2 = vsub.s32 0, %v415_v1 }
  0x5f   :  { %2309 = vmatprep.subr.bf16.mxu0 %v2578_v3  ;;  %2323 = vmatprep.mubr.bf16.mxu0 %v124_v8  ;;  %v2584_v17 = vld [vmem:[#allocation7 + $0x38] sm:$0xff]   ;;  %v126_v18 = vpack.c.bf16 %v113_v16, %v112_v15  ;;  %v114_v19 = vld [vmem:[#allocation2 + $0x30] sm:$0xff]  ;;  %v116_v22 = vld [vmem:[#allocation2 + $0x40] sm:$0xff] }
  0x60   :  { %2340 = vmatpush3.bf16.xpose.msra.mxu1 %v124_v8  ;;  %v115_v20 = vld [vmem:[#allocation2 + $0x38] sm:$0xff]  ;;  %v117_v23 = vld [vmem:[#allocation2 + $0x48] sm:$0xff]  ;;  %v118_v25 = vld [vmem:[#allocation2 + $0x50] sm:$0xff] }
  0x61   :  { %2341 = vmatprep.subr.bf16.mxu1 %v2942_v0  ;;  %v127_v21 = vpack.c.bf16 %v115_v20, %v114_v19  ;;  %v128_v24 = vpack.c.bf16 %v117_v23, %v116_v22  ;;  %v119_v26 = vld [vmem:[#allocation2 + $0x58] sm:$0xff]  ;;  %v120_v27 = vld [vmem:[#allocation2 + $0x60] sm:$0xff]  ;;  %v121_v28 = vld [vmem:[#allocation2 + $0x68] sm:$0xff] }
  0x62   :  { %2310 = vmatpush3.bf16.msra.mxu0 %v2578_v3  ;;  %v129_v29 = vpack.c.bf16 %v119_v26, %v118_v25  ;;  %v130_v30 = vpack.c.bf16 %v121_v28, %v120_v27  ;;  %v122_v31 = vld [vmem:[#allocation2 + $0x70] sm:$0xff]  ;;  %v123_v32 = vld [vmem:[#allocation2 + $0x78] sm:$0xff]  ;;  %v293_v34 = vld [vmem:[%s3605_s5] sm:$0x1] }
  0x63   :  { %2311 = vmatprep.subr.bf16.mxu0 %v2579_v4  ;;  %v131_v33 = vpack.c.bf16 %v123_v32, %v122_v31  ;;  %v466_v3 = vld [vmem:[#allocation5] sm:$0xff] }
  0x64   :  { %v472_v7 = vunpack.c.2.s8 %v466_v3  ;;  %v471_v11 = vunpack.c.1.s8 %v466_v3 }
  0x66   :  { %2312 = vmatpush3.bf16.msra.mxu0 %v2579_v4 }
  0x67   :  { %2313 = vmatprep.subr.bf16.mxu0 %v2580_v5 }
  0x68   :  { %2342 = vmatpush3.bf16.xpose.msra.mxu1 %v125_v14 }
  0x69   :  { %2343 = vmatprep.subr.bf16.mxu1 %v2942_v0 }
  0x6a   :  { %2314 = vmatpush3.bf16.msra.mxu0 %v2580_v5  ;;  %v470_v5 = vunpack.c.0.s8 %v466_v3 }
  0x6b   :  { %2315 = vmatprep.subr.bf16.mxu0 %v2581_v9 }
  0x6c   :  { %v3104_v10 = vcvt.s32.f32 %v470_v5 }
  0x6e   :  { %2316 = vmatpush3.bf16.msra.mxu0 %v2581_v9  ;;  %vm502_vm1 = vcmp.gt.f32.partialorder %v3104_v10, 0.0 }
  0x6f   :  { %2317 = vmatprep.subr.bf16.mxu0 %v2582_v12 }
  0x70   :  { %2344 = vmatpush3.bf16.xpose.msra.mxu1 %v126_v18 }
  0x71   :  { %2345 = vmatprep.subr.bf16.mxu1 %v2942_v0 }
  0x72   :  { %2318 = vmatpush3.bf16.msra.mxu0 %v2582_v12 }
  0x73   :  { %2319 = vmatprep.subr.bf16.mxu0 %v2583_v13 }
  0x76   :  { %2320 = vmatpush3.bf16.msra.mxu0 %v2583_v13  ;;  %v467_v13 = vld [vmem:[#allocation5 + $0x8] sm:$0xff] }
  0x77   :  { %2321 = vmatprep.subr.bf16.mxu0 %v2584_v17  ;;  %v474_v22 = vunpack.c.0.s8 %v467_v13  ;;  %v475_v27 = vunpack.c.1.s8 %v467_v13 }
  0x78   :  { %2346 = vmatpush3.bf16.xpose.msra.mxu1 %v127_v21 }
  0x79   :  { %2347 = vmatprep.subr.bf16.mxu1 %v2942_v0  ;;  %v3123_v32 = vcvt.s32.f32 %v474_v22 }
  0x7a   :  { %2322 = vmatpush3.bf16.msra.mxu0 %v2584_v17 }
  0x7b   :  { %vm506_vm5 = vcmp.gt.f32.partialorder %v3123_v32, 0.0 }
  0x7d   :  { %2324 = vmatmul.mubr.bf16.vlgmr.msra.gmra.mrb[0].mxu0 %v125_v14  ;;  %v473_v14 = vunpack.c.3.s8 %v466_v3  ;;  %v3162_v3 = vld [vmem:[#allocation5 + $0x18] sm:$0xff] }
  0x7e   :  { %2327 = vmatprep.mubr.bf16.mxu0 %v126_v18  ;;  %v3107_v18 = vcvt.s32.f32 %v472_v7 }
  0x7f   :  { %v3114_v26 = vcvt.s32.f32 %v473_v14 }
  0x80   :  { %2348 = vmatpush3.bf16.xpose.msra.mxu1 %v128_v24  ;;  %vm504_vm2 = vcmp.gt.f32.partialorder %v3107_v18, 0.0 }
  0x81   :  { %2349 = vmatprep.subr.bf16.mxu1 %v2942_v0  ;;  %vm505_vm4 = vcmp.gt.f32.partialorder %v3114_v26, 0.0 }
  0x85   :  { %2328 = vmatmul.mubr.bf16.gmra.mrb[4].mxu0 %v127_v21  ;;  %v3111_v21 = vcvt.s32.f32 %v471_v11 }
  0x86   :  { %2331 = vmatprep.mubr.bf16.mxu0 %v128_v24 }
  0x87   :  { %vm503_vm3 = vcmp.gt.f32.partialorder %v3111_v21, 0.0 }
  0x88   :  { %2350 = vmatpush3.bf16.xpose.msra.mxu1 %v129_v29 }
  0x89   :  { %2351 = vmatprep.subr.bf16.mxu1 %v2942_v0 }
  0x8d   :  { %2332 = vmatmul.mubr.bf16.gmra.mrb[8].mxu0 %v129_v29 }
  0x8e   :  { %2335 = vmatprep.mubr.bf16.mxu0 %v130_v30 }
  0x90   :  { %2352 = vmatpush3.bf16.xpose.msra.mxu1 %v130_v30 }
  0x91   :  { %2353 = vmatprep.subr.bf16.mxu1 %v2942_v0 }
  0x95   :  { %2336 = vmatmul.mubr.bf16.gmra.mrb[12].mxu0 %v131_v33 }
  0x98   :  { %2354 = vmatpush3.bf16.xpose.msra.mxu1 %v131_v33  ;;  %v476_v33 = vunpack.c.2.s8 %v467_v13 }
  0x99   :  { %2423 = vmatprep.subr.bf16.mxu1 %v2942_v0 }
  0x9f   :  { %2356 = vmatmul.mubr.bf16.vlgmr.msra.gmra.mrb[0].mxu1 %v293_v34 }
  0xa0   :  { %2439 = vmatprep.mubr.msk.bf16.mxu1 %vm2943_vm0, %v2942_v0 }
 0x150   :  { %v2325_v35 = vpop.f32.mrb[0].mxu0 }
 0x151   :  { %346 = vperm.xlu1 %2574, %v2325_v35   ;;  %v230_v36 = vpop.f32.mrb[1].mxu0 }
 0x152   :  { %336 = vperm.xlu0 %2573, %v230_v36   ;;  %v2326_v37 = vpop.f32.mrb[2].mxu0 }
 0x153   :  { %v655_v38 = vpack.c.bf16 %v2326_v37, %v2325_v35  ;;  %v233_v39 = vpop.f32.mrb[3].mxu0 }
 0x154   :  { %v654_v40 = vpack.c.bf16 %v233_v39, %v230_v36  ;;  %v468_v36 = vld [vmem:[#allocation5 + $0x10] sm:$0xff] }
 0x155   :  { %351 = vperm.xlu1 %2574, %v2326_v37  }
 0x156   :  { %341 = vperm.xlu0 %2573, %v233_v39   ;;  %2359 = vmatprep.subr.bf16.mxu0 %v654_v40  ;;  %v3127_v39 = vcvt.s32.f32 %v475_v27 }
 0x157   :  { %2360 = vmatpush3.bf16.msra.mxu0 %v654_v40  ;;  %v477_v40 = vunpack.c.3.s8 %v467_v13 }
 0x158   :  { %v2329_v41 = vpop.f32.mrb[4].mxu0  ;;  %2361 = vmatprep.subr.bf16.mxu0 %v655_v38  ;;  %vm507_vm6 = vcmp.gt.f32.partialorder %v3127_v39, 0.0 }
 0x159   :  { %v246_v42 = vpop.f32.mrb[5].mxu0 }
 0x15a   :  { %356 = vperm.xlu0 %2573, %v246_v42   ;;  %v2330_v43 = vpop.f32.mrb[6].mxu0 }
 0x15b   :  { %v657_v44 = vpack.c.bf16 %v2330_v43, %v2329_v41  ;;  %v249_v45 = vpop.f32.mrb[7].mxu0  ;;  %2362 = vmatpush3.bf16.msra.mxu0 %v655_v38 }
 0x15c   :  { %v656_v46 = vpack.c.bf16 %v249_v45, %v246_v42  ;;  %361 = vperm.xlu1 %2574, %v249_v45  }
 0x15e   :  { %366 = vperm.xlu0 %2573, %v2329_v41   ;;  %2363 = vmatprep.subr.bf16.mxu0 %v656_v46 }
 0x15f   :  { %2364 = vmatpush3.bf16.msra.mxu0 %v656_v46  ;;  %v3141_v46 = vcvt.s32.f32 %v476_v33 }
 0x160   :  { %371 = vperm.xlu1 %2574, %v2330_v43   ;;  %v2333_v47 = vpop.f32.mrb[8].mxu0  ;;  %2365 = vmatprep.subr.bf16.mxu0 %v657_v44 }
 0x161   :  { %v262_v48 = vpop.f32.mrb[9].mxu0  ;;  %vm508_vm7 = vcmp.gt.f32.partialorder %v3141_v46, 0.0 }
 0x162   :  { %376 = vperm.xlu0 %2573, %v262_v48   ;;  %v2334_v49 = vpop.f32.mrb[10].mxu0 }
 0x163   :  { %v659_v50 = vpack.c.bf16 %v2334_v49, %v2333_v47  ;;  %v265_v51 = vpop.f32.mrb[11].mxu0  ;;  %2366 = vmatpush3.bf16.msra.mxu0 %v657_v44 }
 0x164   :  { %v658_v52 = vpack.c.bf16 %v265_v51, %v262_v48  ;;  %381 = vperm.xlu1 %2574, %v265_v51  }
 0x166   :  { %386 = vperm.xlu0 %2573, %v2333_v47   ;;  %2367 = vmatprep.subr.bf16.mxu0 %v658_v52  ;;  %v478_v47 = vunpack.c.0.s8 %v468_v36 }
 0x167   :  { %2368 = vmatpush3.bf16.msra.mxu0 %v658_v52 }
 0x168   :  { %391 = vperm.xlu1 %2574, %v2334_v49   ;;  %v2337_v53 = vpop.f32.mrb[12].mxu0  ;;  %2369 = vmatprep.subr.bf16.mxu0 %v659_v50 }
 0x169   :  { %v278_v54 = vpop.f32.mrb[13].mxu0 }
 0x16a   :  { %396 = vperm.xlu0 %2573, %v278_v54   ;;  %v2338_v55 = vpop.f32.mrb[14].mxu0 }
 0x16b   :  { %v661_v56 = vpack.c.bf16 %v2338_v55, %v2337_v53  ;;  %v281_v57 = vpop.f32.mrb[15].mxu0  ;;  %2370 = vmatpush3.bf16.msra.mxu0 %v659_v50 }
 0x16c   :  { %v660_v58 = vpack.c.bf16 %v281_v57, %v278_v54  ;;  %401 = vperm.xlu1 %2574, %v281_v57   ;;  %v479_v54 = vunpack.c.1.s8 %v468_v36 }
 0x16e   :  { %406 = vperm.xlu0 %2573, %v2337_v53   ;;  %2371 = vmatprep.subr.bf16.mxu0 %v660_v58  ;;  %v3149_v53 = vcvt.s32.f32 %v477_v40  ;;  %v3169_v7 = vcvt.s32.f32 %v479_v54  ;;  %v485_v54 = vunpack.c.3.s8 %v3162_v3 }
 0x16f   :  { %2372 = vmatpush3.bf16.msra.mxu0 %v660_v58 }
 0x170   :  { %411 = vperm.xlu1 %2574, %v2338_v55   ;;  %2373 = vmatprep.subr.bf16.mxu0 %v661_v56  ;;  %vm509_vm8 = vcmp.gt.f32.partialorder %v3149_v53, 0.0  ;;  %vm511_vm10 = vcmp.gt.f32.partialorder %v3169_v7, 0.0 }
 0x172   :  { %v328_v59 = vpop.f32.mrb[0].mxu1 }
 0x173   :  { %2374 = vmatpush3.bf16.msra.mxu0 %v661_v56  ;;  %v2357_v60 = vpop.f32.mrb[1].mxu1  ;;  %v3101_v4 = vrot.slane %v328_v59, %v3098_v2 }
 0x174   :  { %v331_v61 = vpop.f32.mrb[2].mxu1  ;;  %v3159_v60 = vcvt.s32.f32 %v478_v47 }
 0x175   :  { %v2358_v62 = vpop.f32.mrb[3].mxu1  ;;  %v480_v61 = vunpack.c.2.s8 %v468_v36 }
 0x176   :  { %vm510_vm9 = vcmp.gt.f32.partialorder %v3159_v60, 0.0 }
 0x1d0   :  { %v347_v6 = vpop.permute.xlu1 %346 }
 0x1d1   :  { %v420_v8 = vadd.f32 %v3101_v4, %v347_v6  ;;  %v337_v9 = vpop.permute.xlu0 %336 }
 0x1d2   :  { %v418_v12 = vadd.f32 %v3101_v4, %v337_v9 }
 0x1d3   :  { %v436_v15 = vmul.f32 0.2, %v420_v8 }
 0x1d4   :  { %v434_v16 = vmul.f32 0.2, %v418_v12  ;;  %v352_v17 = vpop.permute.xlu1 %351 }
 0x1d5   :  { %v421_v19 = vadd.f32 %v3101_v4, %v352_v17  ;;  %v342_v20 = vpop.permute.xlu0 %341  ;;  %v452_v30 = vmax.f32 %v420_v8, %v436_v15  ;;  %v481_v8 = vunpack.c.3.s8 %v468_v36  ;;  %v3179_v15 = vcvt.s32.f32 %v480_v61 }
 0x1d6   :  { %v419_v23 = vadd.f32 %v3101_v4, %v342_v20  ;;  %v450_v24 = vmax.f32 %v418_v12, %v434_v16  ;;  %v482_v16 = vunpack.c.0.s8 %v3162_v3 }
 0x1d7   :  { %v437_v25 = vmul.f32 0.2, %v421_v19  ;;  %v3132_v43 = vsel %vm504_vm2, %v452_v30, -1e+30  ;;  %vm512_vm11 = vcmp.gt.f32.partialorder %v3179_v15, 0.0 }
 0x1d8   :  { %v435_v28 = vmul.f32 0.2, %v419_v23  ;;  %v3118_v29 = vsel %vm502_vm1, %v450_v24, -1e+30  ;;  %v3188_v24 = vcvt.s32.f32 %v481_v8  ;;  %v3198_v33 = vcvt.s32.f32 %v482_v16 }
 0x1d9   :  { %v357_v31 = vpop.permute.xlu0 %356  ;;  %534 = vmax.xlane.f32.xlu0 %v3118_v29  ;;  %v453_v38 = vmax.f32 %v421_v19, %v437_v25 }
 0x1da   :  { %v422_v34 = vadd.f32 %v3101_v4, %v357_v31  ;;  %v451_v35 = vmax.f32 %v419_v23, %v435_v28  ;;  %vm513_vm12 = vcmp.gt.f32.partialorder %v3188_v24, 0.0  ;;  %vm3612_vm13 = vcmp.gt.f32.partialorder %v3198_v33, 0.0 }
 0x1db   :  { %v362_v37 = vpop.permute.xlu1 %361  ;;  %v3146_v52 = vsel %vm505_vm4, %v453_v38, -1e+30 }
 0x1dc   :  { %v438_v41 = vmul.f32 0.2, %v422_v34  ;;  %v423_v42 = vadd.f32 %v3101_v4, %v362_v37  ;;  %v3136_v44 = vsel %vm503_vm3, %v451_v35, -1e+30  ;;  %v483_v35 = vunpack.c.1.s8 %v3162_v3 }
 0x1dd   :  { %v367_v45 = vpop.permute.xlu0 %366  ;;  %538 = vmax.xlane.f32.xlu0 %v3132_v43  ;;  %536 = vmax.xlane.f32.xlu1 %v3136_v44 }
 0x1de   :  { %v439_v48 = vmul.f32 0.2, %v423_v42  ;;  %v424_v49 = vadd.f32 %v3101_v4, %v367_v45  ;;  %v454_v50 = vmax.f32 %v422_v34, %v438_v41  ;;  %v484_v34 = vunpack.c.2.s8 %v3162_v3 }
 0x1df   :  { %v372_v51 = vpop.permute.xlu1 %371  ;;  %v3235_v3 = vcvt.s32.f32 %v485_v54 }
 0x1e0   :  { %v440_v55 = vmul.f32 0.2, %v424_v49  ;;  %v425_v56 = vadd.f32 %v3101_v4, %v372_v51  ;;  %v3154_v57 = vsel %vm506_vm5, %v454_v50, -1e+30  ;;  %v455_v58 = vmax.f32 %v423_v42, %v439_v48 }
 0x1e1   :  { %v377_v59 = vpop.permute.xlu0 %376  ;;  %540 = vmax.xlane.f32.xlu0 %v3146_v52  ;;  %542 = vmax.xlane.f32.xlu1 %v3154_v57  ;;  %v3216_v50 = vcvt.s32.f32 %v484_v34  ;;  %v3218_v51 = vcvt.s32.f32 %v483_v35 }
 0x1e2   :  { %v441_v62 = vmul.f32 0.2, %v425_v56  ;;  %v426_v63 = vadd.f32 %v3101_v4, %v377_v59  ;;  %v456_v1 = vmax.f32 %v424_v49, %v440_v55  ;;  %v3166_v6 = vsel %vm507_vm6, %v455_v58, -1e+30 }
 0x1e3   :  { %v382_v5 = vpop.permute.xlu1 %381  ;;  %vm516_vm14 = vcmp.gt.f32.partialorder %v3216_v50, 0.0  ;;  %vm515_vm15 = vcmp.gt.f32.partialorder %v3218_v51, 0.0 }
 0x1e4   :  { %v442_v9 = vmul.f32 0.2, %v426_v63  ;;  %v427_v11 = vadd.f32 %v3101_v4, %v382_v5  ;;  %v3174_v12 = vsel %vm508_vm7, %v456_v1, -1e+30  ;;  %v457_v13 = vmax.f32 %v425_v56, %v441_v62 }
 0x1e5   :  { %v387_v14 = vpop.permute.xlu0 %386  ;;  %544 = vmax.xlane.f32.xlu0 %v3166_v6  ;;  %546 = vmax.xlane.f32.xlu1 %v3174_v12 }
 0x1e6   :  { %v443_v17 = vmul.f32 0.2, %v427_v11  ;;  %v428_v19 = vadd.f32 %v3101_v4, %v387_v14  ;;  %v458_v20 = vmax.f32 %v426_v63, %v442_v9  ;;  %v3185_v23 = vsel %vm509_vm8, %v457_v13, -1e+30 }
 0x1e7   :  { %v392_v22 = vpop.permute.xlu1 %391 }
 0x1e8   :  { %v444_v25 = vmul.f32 0.2, %v428_v19  ;;  %v429_v27 = vadd.f32 %v3101_v4, %v392_v22  ;;  %v3193_v28 = vsel %vm510_vm9, %v458_v20, -1e+30  ;;  %v459_v30 = vmax.f32 %v427_v11, %v443_v17 }
 0x1e9   :  { %548 = vmax.xlane.f32.xlu0 %v3185_v23  ;;  %v397_v31 = vpop.permute.xlu0 %396  ;;  %550 = vmax.xlane.f32.xlu1 %v3193_v28 }
 0x1ea   :  { %v445_v36 = vmul.f32 0.2, %v429_v27  ;;  %v430_v37 = vadd.f32 %v3101_v4, %v397_v31  ;;  %v460_v38 = vmax.f32 %v428_v19, %v444_v25  ;;  %v3205_v41 = vsel %vm511_vm10, %v459_v30, -1e+30 }
 0x1eb   :  { %v402_v40 = vpop.permute.xlu1 %401 }
 0x1ec   :  { %v446_v42 = vmul.f32 0.2, %v430_v37  ;;  %v431_v45 = vadd.f32 %v3101_v4, %v402_v40  ;;  %v3211_v47 = vsel %vm512_vm11, %v460_v38, -1e+30  ;;  %v461_v48 = vmax.f32 %v429_v27, %v445_v36 }
 0x1ed   :  { %552 = vmax.xlane.f32.xlu0 %v3205_v41  ;;  %v407_v49 = vpop.permute.xlu0 %406  ;;  %554 = vmax.xlane.f32.xlu1 %v3211_v47 }
 0x1ee   :  { %v447_v55 = vmul.f32 0.2, %v431_v45  ;;  %v432_v56 = vadd.f32 %v3101_v4, %v407_v49  ;;  %v462_v58 = vmax.f32 %v430_v37, %v446_v42  ;;  %v3224_v61 = vsel %vm513_vm12, %v461_v48, -1e+30 }
 0x1ef   :  { %v412_v59 = vpop.permute.xlu1 %411 }
 0x1f0   :  { %v448_v62 = vmul.f32 0.2, %v432_v56  ;;  %v433_v63 = vadd.f32 %v3101_v4, %v412_v59  ;;  %v3229_v1 = vsel %vm3612_vm13, %v462_v58, -1e+30  ;;  %v463_v5 = vmax.f32 %v431_v45, %v447_v55 }
 0x1f1   :  { %556 = vmax.xlane.f32.xlu0 %v3224_v61  ;;  %558 = vmax.xlane.f32.xlu1 %v3229_v1  ;;  %vm517_vm13 = vcmp.gt.f32.partialorder %v3235_v3, 0.0 }
 0x1f2   :  { %v449_v8 = vmul.f32 0.2, %v433_v63  ;;  %v464_v9 = vmax.f32 %v432_v56, %v448_v62  ;;  %v3243_v11 = vsel %vm515_vm15, %v463_v5, -1e+30 }
 0x1f4   :  { %v3239_v4 = vsel %vm516_vm14, %v464_v9, -1e+30  ;;  %v465_v13 = vmax.f32 %v433_v63, %v449_v8 }
 0x1f5   :  { %562 = vmax.xlane.f32.xlu1 %v3239_v4  ;;  %560 = vmax.xlane.f32.xlu0 %v3243_v11 }
 0x1f6   :  { %v3250_v14 = vsel %vm517_vm13, %v465_v13, -1e+30 }
 0x1f9   :  { %564 = vmax.xlane.f32.xlu0 %v3250_v14 }
 0x266   :  { %v535_v16 = vpop.xlane.xlu0 %534 }
 0x267   :  { %v566_v17 = vsub.f32 %v3118_v29, %v535_v16 }
 0x269   :  { %v582_v19 = vmul.f32 1.442695, %v566_v17 }
 0x26a   :  { %v539_v20 = vpop.xlane.xlu0 %538  ;;  %v537_v22 = vpop.xlane.xlu1 %536 }
 0x26b   :  { %2601 = vpow2.f32 %v582_v19  ;;  %v568_v25 = vsub.f32 %v3132_v43, %v539_v20  ;;  %v567_v27 = vsub.f32 %v3136_v44, %v537_v22 }
 0x26d   :  { %v586_v30 = vmul.f32 1.442695, %v568_v25  ;;  %v584_v31 = vmul.f32 1.442695, %v567_v27 }
 0x26e   :  { %v541_v34 = vpop.xlane.xlu0 %540  ;;  %v543_v35 = vpop.xlane.xlu1 %542 }
 0x26f   :  { %2603 = vpow2.f32 %v586_v30  ;;  %v569_v36 = vsub.f32 %v3146_v52, %v541_v34  ;;  %v570_v37 = vsub.f32 %v3154_v57, %v543_v35 }
 0x270   :  { %2605 = vpow2.f32 %v584_v31 }
 0x271   :  { %v588_v38 = vmul.f32 1.442695, %v569_v36  ;;  %v590_v29 = vmul.f32 1.442695, %v570_v37 }
 0x272   :  { %v545_v40 = vpop.xlane.xlu0 %544  ;;  %v547_v42 = vpop.xlane.xlu1 %546 }
 0x273   :  { %2607 = vpow2.f32 %v588_v38  ;;  %v571_v45 = vsub.f32 %v3166_v6, %v545_v40  ;;  %v572_v43 = vsub.f32 %v3174_v12, %v547_v42 }
 0x274   :  { %2609 = vpow2.f32 %v590_v29 }
 0x275   :  { %v2602_v44 = vpop.eup %2601  ;;  %v592_v48 = vmul.f32 1.442695, %v571_v45  ;;  %v594_v49 = vmul.f32 1.442695, %v572_v43 }
 0x276   :  { %v549_v54 = vpop.xlane.xlu0 %548  ;;  %614 = vadd.xlane.f32.xlu1 %v2602_v44  ;;  %v551_v55 = vpop.xlane.xlu1 %550 }
 0x277   :  { %2611 = vpow2.f32 %v592_v48  ;;  %v573_v52 = vsub.f32 %v3185_v23, %v549_v54  ;;  %v574_v57 = vsub.f32 %v3193_v28, %v551_v55 }
 0x278   :  { %2613 = vpow2.f32 %v594_v49 }
 0x279   :  { %v2604_v56 = vpop.eup %2603  ;;  %v596_v58 = vmul.f32 1.442695, %v573_v52  ;;  %v598_v59 = vmul.f32 1.442695, %v574_v57 }
 0x27a   :  { %v2606_v62 = vpop.eup %2605  ;;  %v553_v6 = vpop.xlane.xlu0 %552  ;;  %618 = vadd.xlane.f32.xlu1 %v2604_v56 }
 0x27b   :  { %v555_v12 = vpop.xlane.xlu1 %554  ;;  %2615 = vpow2.f32 %v596_v58  ;;  %v575_v63 = vsub.f32 %v3205_v41, %v553_v6  ;;  %616 = vadd.xlane.f32.xlu0 %v2606_v62  ;;  %v646_v8 = vpack.c.bf16 %v2606_v62, %v2602_v44  ;;  %v2586_v58 = vld [vmem:[#allocation8 + $0x8] sm:$0xff]   ;;  %v2588_v62 = vld [vmem:[#allocation8 + $0x18] sm:$0xff]   ;;  %v2589_v6 = vld [vmem:[#allocation8 + $0x20] sm:$0xff]  }
 0x27c   :  { %v576_v5 = vsub.f32 %v3211_v47, %v555_v12  ;;  %2617 = vpow2.f32 %v598_v59  ;;  %v2587_v59 = vld [vmem:[#allocation8 + $0x10] sm:$0xff]   ;;  %v2590_v12 = vld [vmem:[#allocation8 + $0x28] sm:$0xff]  }
 0x27d   :  { %v2608_v9 = vpop.eup %2607  ;;  %v600_v23 = vmul.f32 1.442695, %v575_v63  ;;  %2375 = vmatprep.mubr.bf16.mxu0 %v646_v8  ;;  %v2591_v63 = vld [vmem:[#allocation8 + $0x30] sm:$0xff]  }
 0x27e   :  { %v602_v13 = vmul.f32 1.442695, %v576_v5  ;;  %v2610_v28 = vpop.eup %2609  ;;  %v557_v16 = vpop.xlane.xlu0 %556  ;;  %v647_v19 = vpack.c.bf16 %v2608_v9, %v2604_v56  ;;  %v2585_v56 = vld [vmem:[#allocation8] sm:$0xff]   ;;  %v2592_v5 = vld [vmem:[#allocation8 + $0x38] sm:$0xff]  }
 0x27f   :  { %v559_v17 = vpop.xlane.xlu1 %558  ;;  %2619 = vpow2.f32 %v600_v23  ;;  %v577_v20 = vsub.f32 %v3224_v61, %v557_v16  ;;  %620 = vadd.xlane.f32.xlu0 %v2608_v9  ;;  %622 = vadd.xlane.f32.xlu1 %v2610_v28 }
 0x280   :  { %v578_v41 = vsub.f32 %v3229_v1, %v559_v17  ;;  %2621 = vpow2.f32 %v602_v13  ;;  %2376 = vmatmul.mubr.bf16.vlgmr.msra.gmra.mrb[16].mxu0 %v647_v19  ;;  %2391 = vmatprep.subr.bf16.mxu0 %v2585_v56 }
 0x281   :  { %v2612_v47 = vpop.eup %2611  ;;  %v604_v22 = vmul.f32 1.442695, %v577_v20  ;;  %2392 = vmatpush3.bf16.msra.mxu0 %v2585_v56 }
 0x282   :  { %v606_v25 = vmul.f32 1.442695, %v578_v41  ;;  %v2614_v27 = vpop.eup %2613  ;;  %v561_v30 = vpop.xlane.xlu0 %560  ;;  %v648_v34 = vpack.c.bf16 %v2612_v47, %v2610_v28  ;;  %2393 = vmatprep.subr.bf16.mxu0 %v2586_v58 }
 0x283   :  { %v563_v31 = vpop.xlane.xlu1 %562  ;;  %2623 = vpow2.f32 %v604_v22  ;;  %v579_v35 = vsub.f32 %v3243_v11, %v561_v30  ;;  %624 = vadd.xlane.f32.xlu0 %v2612_v47  ;;  %626 = vadd.xlane.f32.xlu1 %v2614_v27 }
 0x284   :  { %v580_v61 = vsub.f32 %v3239_v4, %v563_v31  ;;  %2625 = vpow2.f32 %v606_v25  ;;  %2379 = vmatprep.mubr.bf16.mxu0 %v648_v34 }
 0x285   :  { %v2616_v36 = vpop.eup %2615  ;;  %v608_v1 = vmul.f32 1.442695, %v579_v35  ;;  %2394 = vmatpush3.bf16.msra.mxu0 %v2586_v58 }
 0x286   :  { %v610_v37 = vmul.f32 1.442695, %v580_v61  ;;  %v2618_v38 = vpop.eup %2617  ;;  %v565_v29 = vpop.xlane.xlu0 %564  ;;  %v649_v40 = vpack.c.bf16 %v2616_v36, %v2614_v27  ;;  %2395 = vmatprep.subr.bf16.mxu0 %v2587_v59  ;;  %v3272_v27 = vld [vmem:[%s3608_s8] ss:$0 sm:$0xff] }
 0x287   :  { %2627 = vpow2.f32 %v608_v1  ;;  %v581_v42 = vsub.f32 %v3250_v14, %v565_v29  ;;  %628 = vadd.xlane.f32.xlu0 %v2616_v36  ;;  %630 = vadd.xlane.f32.xlu1 %v2618_v38 }
 0x288   :  { %2629 = vpow2.f32 %v610_v37  ;;  %2380 = vmatmul.mubr.bf16.gmra.mrb[20].mxu0 %v649_v40 }
 0x289   :  { %v2620_v11 = vpop.eup %2619  ;;  %v612_v45 = vmul.f32 1.442695, %v581_v42  ;;  %2396 = vmatpush3.bf16.msra.mxu0 %v2587_v59 }
 0x28a   :  { %v2622_v43 = vpop.eup %2621  ;;  %v650_v44 = vpack.c.bf16 %v2620_v11, %v2618_v38  ;;  %2397 = vmatprep.subr.bf16.mxu0 %v2588_v62 }
 0x28b   :  { %2631 = vpow2.f32 %v612_v45  ;;  %632 = vadd.xlane.f32.xlu0 %v2620_v11  ;;  %634 = vadd.xlane.f32.xlu1 %v2622_v43 }
 0x28c   :  { %2383 = vmatprep.mubr.bf16.mxu0 %v650_v44 }
 0x28d   :  { %v2624_v4 = vpop.eup %2623  ;;  %2398 = vmatpush3.bf16.msra.mxu0 %v2588_v62 }
 0x28e   :  { %v2626_v48 = vpop.eup %2625  ;;  %v651_v49 = vpack.c.bf16 %v2624_v4, %v2622_v43  ;;  %2399 = vmatprep.subr.bf16.mxu0 %v2589_v6 }
 0x28f   :  { %636 = vadd.xlane.f32.xlu0 %v2624_v4  ;;  %638 = vadd.xlane.f32.xlu1 %v2626_v48 }
 0x290   :  { %2384 = vmatmul.mubr.bf16.gmra.mrb[24].mxu0 %v651_v49 }
 0x291   :  { %v2628_v54 = vpop.eup %2627  ;;  %2400 = vmatpush3.bf16.msra.mxu0 %v2589_v6 }
 0x292   :  { %v2630_v14 = vpop.eup %2629  ;;  %v652_v55 = vpack.c.bf16 %v2628_v54, %v2626_v48  ;;  %2401 = vmatprep.subr.bf16.mxu0 %v2590_v12 }
 0x293   :  { %640 = vadd.xlane.f32.xlu0 %v2628_v54  ;;  %642 = vadd.xlane.f32.xlu1 %v2630_v14 }
 0x294   :  { %2387 = vmatprep.mubr.bf16.mxu0 %v652_v55 }
 0x295   :  { %v2632_v52 = vpop.eup %2631  ;;  %2402 = vmatpush3.bf16.msra.mxu0 %v2590_v12 }
 0x296   :  { %v653_v57 = vpack.c.bf16 %v2632_v52, %v2630_v14  ;;  %2403 = vmatprep.subr.bf16.mxu0 %v2591_v63 }
 0x297   :  { %644 = vadd.xlane.f32.xlu0 %v2632_v52 }
 0x298   :  { %2388 = vmatmul.mubr.bf16.gmra.mrb[28].mxu0 %v653_v57 }
 0x299   :  { %2404 = vmatpush3.bf16.msra.mxu0 %v2591_v63 }
 0x29a   :  { %2405 = vmatprep.subr.bf16.mxu0 %v2592_v5 }
 0x29d   :  { %2406 = vmatpush3.bf16.msra.mxu0 %v2592_v5 }
 0x303   :  { %v615_v8 = vpop.xlane.xlu1 %614 }
 0x307   :  { %v619_v23 = vpop.xlane.xlu1 %618 }
 0x308   :  { %v617_v9 = vpop.xlane.xlu0 %616  ;;  %2633 = vrcp.f32 %v619_v23 }
 0x309   :  { %2635 = vrcp.f32 %v615_v8 }
 0x30c   :  { %v621_v13 = vpop.xlane.xlu0 %620  ;;  %v623_v28 = vpop.xlane.xlu1 %622 }
 0x30d   :  { %2637 = vrcp.f32 %v621_v13 }
 0x30e   :  { %2639 = vrcp.f32 %v617_v9 }
 0x310   :  { %v625_v16 = vpop.xlane.xlu0 %624  ;;  %v627_v17 = vpop.xlane.xlu1 %626 }
 0x311   :  { %2641 = vrcp.f32 %v627_v17 }
 0x312   :  { %2643 = vrcp.f32 %v623_v28  ;;  %v2634_v22 = vpop.eup %2633 }
 0x313   :  { %v2636_v30 = vpop.eup %2635 }
 0x314   :  { %v629_v19 = vpop.xlane.xlu0 %628  ;;  %v631_v20 = vpop.xlane.xlu1 %630 }
 0x315   :  { %2645 = vrcp.f32 %v629_v19 }
 0x316   :  { %2647 = vrcp.f32 %v625_v16 }
 0x317   :  { %v2638_v61 = vpop.eup %2637 }
 0x318   :  { %v633_v41 = vpop.xlane.xlu0 %632  ;;  %v635_v47 = vpop.xlane.xlu1 %634 }
 0x319   :  { %v2640_v37 = vpop.eup %2639  ;;  %2649 = vrcp.f32 %v635_v47 }
 0x31a   :  { %2651 = vrcp.f32 %v631_v20 }
 0x31b   :  { %v2642_v54 = vpop.eup %2641 }
 0x31c   :  { %v637_v31 = vpop.xlane.xlu0 %636  ;;  %v639_v45 = vpop.xlane.xlu1 %638 }
 0x31d   :  { %2653 = vrcp.f32 %v637_v31  ;;  %v2644_v57 = vpop.eup %2643 }
 0x31e   :  { %2655 = vrcp.f32 %v633_v41 }
 0x31f   :  { %v2646_v62 = vpop.eup %2645 }
 0x320   :  { %v641_v4 = vpop.xlane.xlu0 %640  ;;  %v2648_v5 = vpop.eup %2647 }
 0x321   :  { %v643_v8 = vpop.xlane.xlu1 %642 }
 0x322   :  { %2657 = vrcp.f32 %v643_v8 }
 0x323   :  { %2659 = vrcp.f32 %v639_v45 }
 0x324   :  { %v645_v17 = vpop.xlane.xlu0 %644 }
 0x325   :  { %2661 = vrcp.f32 %v645_v17 }
 0x326   :  { %2663 = vrcp.f32 %v641_v4 }
 0x353   :  { %v2377_v25 = vpop.f32.mrb[16].mxu0 }
 0x354   :  { %v777_v34 = vmul.f32 %v2634_v22, %v2377_v25  ;;  %v696_v35 = vpop.f32.mrb[17].mxu0  ;;  %v2650_v22 = vpop.eup %2649 }
 0x355   :  { %v775_v36 = vmul.f32 %v2636_v30, %v696_v35  ;;  %v2378_v1 = vpop.f32.mrb[18].mxu0 }
 0x356   :  { %v800_v38 = vadd.f32 %v3272_v27, %v777_v34  ;;  %v778_v29 = vmul.f32 %v2638_v61, %v2378_v1  ;;  %v699_v40 = vpop.f32.mrb[19].mxu0  ;;  %v2652_v34 = vpop.eup %2651 }
 0x357   :  { %v798_v42 = vadd.f32 %v3272_v27, %v775_v36  ;;  %v776_v11 = vmul.f32 %v2640_v37, %v699_v40  ;;  %v2654_v1 = vpop.eup %2653 }
 0x358   :  { %v801_v43 = vadd.f32 %v3272_v27, %v778_v29  ;;  %v816_v48 = vmax.f32 %v800_v38, 0.0  ;;  %v2656_v40 = vpop.eup %2655 }
 0x359   :  { %v799_v44 = vadd.f32 %v3272_v27, %v776_v11  ;;  %v814_v14 = vmax.f32 %v798_v42, 0.0 }
 0x35a   :  { %v817_v49 = vmax.f32 %v801_v43, 0.0 }
 0x35b   :  { %v815_v55 = vmax.f32 %v799_v44, 0.0  ;;  %v2381_v52 = vpop.f32.mrb[20].mxu0 }
 0x35c   :  { %v831_v56 = vpack.c.bf16 %v817_v49, %v816_v48  ;;  %v781_v58 = vmul.f32 %v2642_v54, %v2381_v52  ;;  %v712_v59 = vpop.f32.mrb[21].mxu0 }
 0x35d   :  { %v779_v6 = vmul.f32 %v2644_v57, %v712_v59  ;;  %v2382_v12 = vpop.f32.mrb[22].mxu0  ;;  %v830_v63 = vpack.c.bf16 %v815_v55, %v814_v14  ;;  %v2658_v14 = vpop.eup %2657 }
 0x35e   :  { %v804_v9 = vadd.f32 %v3272_v27, %v781_v58  ;;  %v782_v23 = vmul.f32 %v2646_v62, %v2382_v12  ;;  %v715_v13 = vpop.f32.mrb[23].mxu0  ;;  %v2660_v58 = vpop.eup %2659 }
 0x35f   :  { %v802_v28 = vadd.f32 %v3272_v27, %v779_v6  ;;  %v780_v16 = vmul.f32 %v2648_v5, %v715_v13  ;;  %2407 = vmatprep.mubr.bf16.mxu0 %v830_v63  ;;  %2424 = vmatpush3.bf16.xpose.msra.mxu1 %v830_v63  ;;  %v2662_v12 = vpop.eup %2661 }
 0x360   :  { %v805_v19 = vadd.f32 %v3272_v27, %v782_v23  ;;  %2408 = vmatmul.mubr.bf16.vlgmr.msra.gmra.mrb[32].mxu0 %v831_v56  ;;  %2425 = vmatprep.subr.bf16.mxu1 %v2942_v0  ;;  %v820_v41 = vmax.f32 %v804_v9, 0.0  ;;  %v2664_v8 = vpop.eup %2663 }
 0x361   :  { %v803_v20 = vadd.f32 %v3272_v27, %v780_v16  ;;  %v818_v25 = vmax.f32 %v802_v28, 0.0 }
 0x362   :  { %v821_v47 = vmax.f32 %v805_v19, 0.0 }
 0x363   :  { %v819_v30 = vmax.f32 %v803_v20, 0.0  ;;  %v2385_v31 = vpop.f32.mrb[24].mxu0 }
 0x364   :  { %v785_v35 = vmul.f32 %v2650_v22, %v2385_v31  ;;  %v728_v61 = vpop.f32.mrb[25].mxu0  ;;  %v833_v36 = vpack.c.bf16 %v821_v47, %v820_v41 }
 0x365   :  { %v783_v37 = vmul.f32 %v2652_v34, %v728_v61  ;;  %v2386_v38 = vpop.f32.mrb[26].mxu0  ;;  %v832_v29 = vpack.c.bf16 %v819_v30, %v818_v25 }
 0x366   :  { %v808_v42 = vadd.f32 %v3272_v27, %v785_v35  ;;  %v786_v11 = vmul.f32 %v2654_v1, %v2386_v38  ;;  %v731_v45 = vpop.f32.mrb[27].mxu0 }
 0x367   :  { %v806_v43 = vadd.f32 %v3272_v27, %v783_v37  ;;  %v784_v44 = vmul.f32 %v2656_v40, %v731_v45  ;;  %2411 = vmatprep.mubr.bf16.mxu0 %v832_v29  ;;  %2426 = vmatpush3.bf16.xpose.msra.mxu1 %v831_v56 }
 0x368   :  { %v809_v48 = vadd.f32 %v3272_v27, %v786_v11  ;;  %2412 = vmatmul.mubr.bf16.gmra.mrb[36].mxu0 %v833_v36  ;;  %2427 = vmatprep.subr.bf16.mxu1 %v2942_v0  ;;  %v824_v49 = vmax.f32 %v808_v42, 0.0 }
 0x369   :  { %v807_v4 = vadd.f32 %v3272_v27, %v784_v44  ;;  %v822_v55 = vmax.f32 %v806_v43, 0.0 }
 0x36a   :  { %v825_v54 = vmax.f32 %v809_v48, 0.0 }
 0x36b   :  { %v823_v52 = vmax.f32 %v807_v4, 0.0  ;;  %v2389_v57 = vpop.f32.mrb[28].mxu0 }
 0x36c   :  { %v789_v59 = vmul.f32 %v2658_v14, %v2389_v57  ;;  %v744_v62 = vpop.f32.mrb[29].mxu0  ;;  %v835_v6 = vpack.c.bf16 %v825_v54, %v824_v49 }
 0x36d   :  { %v787_v63 = vmul.f32 %v2660_v58, %v744_v62  ;;  %v2390_v56 = vpop.f32.mrb[30].mxu0  ;;  %v834_v5 = vpack.c.bf16 %v823_v52, %v822_v55 }
 0x36e   :  { %v812_v9 = vadd.f32 %v3272_v27, %v789_v59  ;;  %v790_v23 = vmul.f32 %v2662_v12, %v2390_v56  ;;  %v747_v13 = vpop.f32.mrb[31].mxu0 }
 0x36f   :  { %v810_v28 = vadd.f32 %v3272_v27, %v787_v63  ;;  %v788_v16 = vmul.f32 %v2664_v8, %v747_v13  ;;  %2415 = vmatprep.mubr.bf16.mxu0 %v834_v5  ;;  %2428 = vmatpush3.bf16.xpose.msra.mxu1 %v832_v29 }
 0x370   :  { %v813_v17 = vadd.f32 %v3272_v27, %v790_v23  ;;  %2416 = vmatmul.mubr.bf16.gmra.mrb[40].mxu0 %v835_v6  ;;  %2429 = vmatprep.subr.bf16.mxu1 %v2942_v0  ;;  %v828_v20 = vmax.f32 %v812_v9, 0.0 }
 0x371   :  { %v811_v19 = vadd.f32 %v3272_v27, %v788_v16  ;;  %v826_v47 = vmax.f32 %v810_v28, 0.0  ;;  %v999_v27 = vld [vmem:[%s3606_s6] sm:$0x1] }
 0x372   :  { %v829_v41 = vmax.f32 %v813_v17, 0.0 }
 0x373   :  { %v827_v22 = vmax.f32 %v811_v19, 0.0 }
 0x374   :  { %v837_v25 = vpack.c.bf16 %v829_v41, %v828_v20 }
 0x375   :  { %v836_v30 = vpack.c.bf16 %v827_v22, %v826_v47 }
 0x377   :  { %2419 = vmatprep.mubr.bf16.mxu0 %v836_v30  ;;  %2430 = vmatpush3.bf16.xpose.msra.mxu1 %v833_v36 }
 0x378   :  { %2420 = vmatmul.mubr.bf16.gmra.mrb[44].mxu0 %v837_v25  ;;  %2431 = vmatprep.subr.bf16.mxu1 %v2942_v0 }
 0x37f   :  { %2432 = vmatpush3.bf16.xpose.msra.mxu1 %v834_v5 }
 0x380   :  { %2433 = vmatprep.subr.bf16.mxu1 %v2942_v0 }
 0x387   :  { %2434 = vmatpush3.bf16.xpose.msra.mxu1 %v835_v6 }
 0x388   :  { %2435 = vmatprep.subr.bf16.mxu1 %v2942_v0 }
 0x38f   :  { %2436 = vmatpush3.bf16.xpose.msra.mxu1 %v836_v30 }
 0x390   :  { %2437 = vmatprep.subr.bf16.mxu1 %v2942_v0 }
 0x397   :  { %2438 = vmatpush3.bf16.xpose.msra.mxu1 %v837_v25 }
 0x398   :  { %2507 = vmatprep.subr.bf16.mxu1 %v2942_v0 }
 0x39e   :  { %2440 = vmatmul.mubr.bf16.vlgmr.msra.gmra.mrb[4].mxu1 %v999_v27 }
 0x39f   :  { %2523 = vmatprep.mubr.msk.bf16.mxu1 %vm2943_vm0, %v2942_v0  ;;  %vm3613_vm0 = vcmp.gt.f32.partialorder %v3198_v33, 0.0 }
 0x433   :  { %v2409_v31 = vpop.f32.mrb[32].mxu0 }
 0x434   :  { %1052 = vperm.xlu1 %2574, %v2409_v31   ;;  %v936_v34 = vpop.f32.mrb[33].mxu0 }
 0x435   :  { %v2410_v35 = vpop.f32.mrb[34].mxu0 }
 0x436   :  { %v1309_v61 = vpack.c.bf16 %v2410_v35, %v2409_v31  ;;  %v939_v36 = vpop.f32.mrb[35].mxu0 }
 0x437   :  { %v1308_v1 = vpack.c.bf16 %v939_v36, %v936_v34  ;;  %1047 = vperm.xlu0 %2573, %v939_v36  }
 0x438   :  { %1042 = vperm.xlu1 %2574, %v936_v34  }
 0x439   :  { %2443 = vmatprep.subr.bf16.mxu0 %v1308_v1 }
 0x43a   :  { %2444 = vmatpush3.bf16.msra.mxu0 %v1308_v1 }
 0x43b   :  { %v2413_v37 = vpop.f32.mrb[36].mxu0  ;;  %2445 = vmatprep.subr.bf16.mxu0 %v1309_v61 }
 0x43c   :  { %1057 = vperm.xlu1 %2574, %v2410_v35   ;;  %1072 = vperm.xlu0 %2573, %v2413_v37   ;;  %v952_v38 = vpop.f32.mrb[37].mxu0 }
 0x43d   :  { %v2414_v29 = vpop.f32.mrb[38].mxu0 }
 0x43e   :  { %v1311_v40 = vpack.c.bf16 %v2414_v29, %v2413_v37  ;;  %v955_v42 = vpop.f32.mrb[39].mxu0  ;;  %2446 = vmatpush3.bf16.msra.mxu0 %v1309_v61 }
 0x43f   :  { %v1310_v11 = vpack.c.bf16 %v955_v42, %v952_v38 }
 0x440   :  { %1062 = vperm.xlu0 %2573, %v952_v38   ;;  %1067 = vperm.xlu1 %2574, %v955_v42  }
 0x441   :  { %2447 = vmatprep.subr.bf16.mxu0 %v1310_v11 }
 0x442   :  { %2448 = vmatpush3.bf16.msra.mxu0 %v1310_v11 }
 0x443   :  { %v2417_v45 = vpop.f32.mrb[40].mxu0  ;;  %2449 = vmatprep.subr.bf16.mxu0 %v1311_v40 }
 0x444   :  { %1077 = vperm.xlu1 %2574, %v2414_v29   ;;  %1092 = vperm.xlu0 %2573, %v2417_v45   ;;  %v968_v43 = vpop.f32.mrb[41].mxu0 }
 0x445   :  { %v2418_v44 = vpop.f32.mrb[42].mxu0 }
 0x446   :  { %v1313_v48 = vpack.c.bf16 %v2418_v44, %v2417_v45  ;;  %v971_v4 = vpop.f32.mrb[43].mxu0  ;;  %2450 = vmatpush3.bf16.msra.mxu0 %v1311_v40 }
 0x447   :  { %v1312_v49 = vpack.c.bf16 %v971_v4, %v968_v43 }
 0x448   :  { %1082 = vperm.xlu0 %2573, %v968_v43   ;;  %1087 = vperm.xlu1 %2574, %v971_v4  }
 0x449   :  { %2451 = vmatprep.subr.bf16.mxu0 %v1312_v49 }
 0x44a   :  { %2452 = vmatpush3.bf16.msra.mxu0 %v1312_v49 }
 0x44b   :  { %v2421_v54 = vpop.f32.mrb[44].mxu0  ;;  %2453 = vmatprep.subr.bf16.mxu0 %v1313_v48 }
 0x44c   :  { %1097 = vperm.xlu1 %2574, %v2418_v44   ;;  %1112 = vperm.xlu0 %2573, %v2421_v54   ;;  %v984_v14 = vpop.f32.mrb[45].mxu0 }
 0x44d   :  { %v2422_v55 = vpop.f32.mrb[46].mxu0 }
 0x44e   :  { %v1315_v52 = vpack.c.bf16 %v2422_v55, %v2421_v54  ;;  %v987_v57 = vpop.f32.mrb[47].mxu0  ;;  %2454 = vmatpush3.bf16.msra.mxu0 %v1313_v48 }
 0x44f   :  { %v1314_v58 = vpack.c.bf16 %v987_v57, %v984_v14 }
 0x450   :  { %1102 = vperm.xlu0 %2573, %v984_v14   ;;  %1107 = vperm.xlu1 %2574, %v987_v57  }
 0x451   :  { %2455 = vmatprep.subr.bf16.mxu0 %v1314_v58 }
 0x452   :  { %2456 = vmatpush3.bf16.msra.mxu0 %v1314_v58 }
 0x453   :  { %2457 = vmatprep.subr.bf16.mxu0 %v1315_v52 }
 0x454   :  { %1117 = vperm.xlu1 %2574, %v2422_v55  }
 0x456   :  { %2458 = vmatpush3.bf16.msra.mxu0 %v1315_v52 }
 0x471   :  { %v1034_v59 = vpop.f32.mrb[4].mxu1 }
 0x472   :  { %v2441_v62 = vpop.f32.mrb[5].mxu1  ;;  %v3304_v63 = vrot.slane %v1034_v59, %v3098_v2 }
 0x473   :  { %v1037_v6 = vpop.f32.mrb[6].mxu1 }
 0x474   :  { %v2442_v12 = vpop.f32.mrb[7].mxu1 }
 0x4b3   :  { %v1053_v56 = vpop.permute.xlu1 %1052 }
 0x4b4   :  { %v1126_v5 = vadd.f32 %v3304_v63, %v1053_v56 }
 0x4b6   :  { %v1048_v8 = vpop.permute.xlu0 %1047  ;;  %v1142_v16 = vmul.f32 0.2, %v1126_v5 }
 0x4b7   :  { %v1125_v9 = vadd.f32 %v3304_v63, %v1048_v8  ;;  %v1043_v23 = vpop.permute.xlu1 %1042 }
 0x4b8   :  { %v1124_v13 = vadd.f32 %v3304_v63, %v1043_v23  ;;  %v1158_v34 = vmax.f32 %v1126_v5, %v1142_v16 }
 0x4b9   :  { %v1141_v28 = vmul.f32 0.2, %v1125_v9 }
 0x4ba   :  { %v1140_v17 = vmul.f32 0.2, %v1124_v13  ;;  %v3325_v40 = vsel %vm504_vm2, %v1158_v34, -1e+30 }
 0x4bb   :  { %v1058_v19 = vpop.permute.xlu1 %1057  ;;  %v1073_v20 = vpop.permute.xlu0 %1072  ;;  %v1157_v41 = vmax.f32 %v1125_v9, %v1141_v28 }
 0x4bc   :  { %v1127_v47 = vadd.f32 %v3304_v63, %v1058_v19  ;;  %v1156_v22 = vmax.f32 %v1124_v13, %v1140_v17  ;;  %v1130_v25 = vadd.f32 %v3304_v63, %v1073_v20 }
 0x4bd   :  { %v3313_v30 = vsel %vm503_vm3, %v1157_v41, -1e+30 }
 0x4be   :  { %v1143_v27 = vmul.f32 0.2, %v1127_v47  ;;  %1190 = vmax.xlane.f32.xlu1 %v3313_v30  ;;  %v3318_v31 = vsel %vm502_vm1, %v1156_v22, -1e+30  ;;  %v1146_v37 = vmul.f32 0.2, %v1130_v25 }
 0x4bf   :  { %v1063_v35 = vpop.permute.xlu0 %1062  ;;  %v1068_v61 = vpop.permute.xlu1 %1067  ;;  %1188 = vmax.xlane.f32.xlu0 %v3318_v31 }
 0x4c0   :  { %v1128_v36 = vadd.f32 %v3304_v63, %v1063_v35  ;;  %v1129_v1 = vadd.f32 %v3304_v63, %v1068_v61  ;;  %v1159_v42 = vmax.f32 %v1127_v47, %v1143_v27  ;;  %v1162_v4 = vmax.f32 %v1130_v25, %v1146_v37 }
 0x4c2   :  { %v1144_v38 = vmul.f32 0.2, %v1128_v36  ;;  %v1145_v29 = vmul.f32 0.2, %v1129_v1  ;;  %v3332_v54 = vsel %vm505_vm4, %v1159_v42, -1e+30 }
 0x4c3   :  { %v1078_v11 = vpop.permute.xlu1 %1077  ;;  %v1093_v45 = vpop.permute.xlu0 %1092  ;;  %1192 = vmax.xlane.f32.xlu0 %v3325_v40  ;;  %v3344_v6 = vsel %vm508_vm7, %v1162_v4, -1e+30 }
 0x4c4   :  { %v1131_v43 = vadd.f32 %v3304_v63, %v1078_v11  ;;  %v1160_v44 = vmax.f32 %v1128_v36, %v1144_v38  ;;  %v1134_v48 = vadd.f32 %v3304_v63, %v1093_v45  ;;  %v1161_v55 = vmax.f32 %v1129_v1, %v1145_v29 }
 0x4c6   :  { %v1147_v49 = vmul.f32 0.2, %v1131_v43  ;;  %v3336_v14 = vsel %vm506_vm5, %v1160_v44, -1e+30  ;;  %v1150_v62 = vmul.f32 0.2, %v1134_v48 }
 0x4c7   :  { %v1083_v52 = vpop.permute.xlu0 %1082  ;;  %v1088_v57 = vpop.permute.xlu1 %1087  ;;  %1194 = vmax.xlane.f32.xlu0 %v3332_v54  ;;  %1196 = vmax.xlane.f32.xlu1 %v3336_v14  ;;  %v3348_v5 = vsel %vm507_vm6, %v1161_v55, -1e+30 }
 0x4c8   :  { %v1132_v58 = vadd.f32 %v3304_v63, %v1083_v52  ;;  %v1133_v59 = vadd.f32 %v3304_v63, %v1088_v57  ;;  %v1163_v8 = vmax.f32 %v1131_v43, %v1147_v49  ;;  %v1166_v17 = vmax.f32 %v1134_v48, %v1150_v62 }
 0x4ca   :  { %v1148_v12 = vmul.f32 0.2, %v1132_v58  ;;  %v1149_v56 = vmul.f32 0.2, %v1133_v59  ;;  %v3356_v20 = vsel %vm509_vm8, %v1163_v8, -1e+30 }
 0x4cb   :  { %v1098_v9 = vpop.permute.xlu1 %1097  ;;  %v1113_v23 = vpop.permute.xlu0 %1112  ;;  %1198 = vmax.xlane.f32.xlu0 %v3348_v5  ;;  %1200 = vmax.xlane.f32.xlu1 %v3344_v6  ;;  %v3368_v61 = vsel %vm512_vm11, %v1166_v17, -1e+30 }
 0x4cc   :  { %v1135_v13 = vadd.f32 %v3304_v63, %v1098_v9  ;;  %v1164_v28 = vmax.f32 %v1132_v58, %v1148_v12  ;;  %v1138_v16 = vadd.f32 %v3304_v63, %v1113_v23  ;;  %v1165_v47 = vmax.f32 %v1133_v59, %v1149_v56 }
 0x4ce   :  { %v1151_v19 = vmul.f32 0.2, %v1135_v13  ;;  %v3360_v41 = vsel %vm510_vm9, %v1164_v28, -1e+30  ;;  %v1154_v35 = vmul.f32 0.2, %v1138_v16 }
 0x4cf   :  { %1202 = vmax.xlane.f32.xlu0 %v3356_v20  ;;  %v1103_v22 = vpop.permute.xlu0 %1102  ;;  %1204 = vmax.xlane.f32.xlu1 %v3360_v41  ;;  %v1108_v25 = vpop.permute.xlu1 %1107  ;;  %v3372_v37 = vsel %vm511_vm10, %v1165_v47, -1e+30 }
 0x4d0   :  { %v1136_v27 = vadd.f32 %v3304_v63, %v1103_v22  ;;  %v1137_v34 = vadd.f32 %v3304_v63, %v1108_v25  ;;  %v1167_v38 = vmax.f32 %v1135_v13, %v1151_v19  ;;  %v1170_v45 = vmax.f32 %v1138_v16, %v1154_v35 }
 0x4d2   :  { %v1152_v36 = vmul.f32 0.2, %v1136_v27  ;;  %v1153_v1 = vmul.f32 0.2, %v1137_v34  ;;  %v3379_v44 = vsel %vm513_vm12, %v1167_v38, -1e+30 }
 0x4d3   :  { %1206 = vmax.xlane.f32.xlu0 %v3372_v37  ;;  %1208 = vmax.xlane.f32.xlu1 %v3368_v61  ;;  %v1118_v29 = vpop.permute.xlu1 %1117  ;;  %v3389_v49 = vsel %vm516_vm14, %v1170_v45, -1e+30 }
 0x4d4   :  { %v1139_v42 = vadd.f32 %v3304_v63, %v1118_v29  ;;  %v1168_v11 = vmax.f32 %v1136_v27, %v1152_v36  ;;  %v1169_v4 = vmax.f32 %v1137_v34, %v1153_v1 }
 0x4d6   :  { %v1155_v43 = vmul.f32 0.2, %v1139_v42  ;;  %v3383_v48 = vsel %vm3613_vm0, %v1168_v11, -1e+30  ;;  %v3393_v63 = vsel %vm515_vm15, %v1169_v4, -1e+30 }
 0x4d7   :  { %1210 = vmax.xlane.f32.xlu0 %v3379_v44  ;;  %1212 = vmax.xlane.f32.xlu1 %v3383_v48 }
 0x4d8   :  { %v1171_v55 = vmax.f32 %v1139_v42, %v1155_v43 }
 0x4da   :  { %v3399_v52 = vsel %vm517_vm13, %v1171_v55, -1e+30 }
 0x4db   :  { %1216 = vmax.xlane.f32.xlu1 %v3389_v49  ;;  %1214 = vmax.xlane.f32.xlu0 %v3393_v63 }
 0x4df   :  { %1218 = vmax.xlane.f32.xlu0 %v3399_v52 }
 0x54b   :  { %v1191_v57 = vpop.xlane.xlu1 %1190 }
 0x54c   :  { %v1221_v58 = vsub.f32 %v3313_v30, %v1191_v57  ;;  %v1189_v59 = vpop.xlane.xlu0 %1188 }
 0x54d   :  { %v1220_v62 = vsub.f32 %v3318_v31, %v1189_v59 }
 0x54e   :  { %v1238_v12 = vmul.f32 1.442695, %v1221_v58 }
 0x54f   :  { %v1236_v56 = vmul.f32 1.442695, %v1220_v62 }
 0x550   :  { %2665 = vpow2.f32 %v1238_v12  ;;  %v1193_v8 = vpop.xlane.xlu0 %1192 }
 0x551   :  { %2667 = vpow2.f32 %v1236_v56  ;;  %v1222_v9 = vsub.f32 %v3325_v40, %v1193_v8 }
 0x553   :  { %v1240_v23 = vmul.f32 1.442695, %v1222_v9 }
 0x554   :  { %v1195_v13 = vpop.xlane.xlu0 %1194  ;;  %v1197_v28 = vpop.xlane.xlu1 %1196 }
 0x555   :  { %2669 = vpow2.f32 %v1240_v23  ;;  %v1223_v16 = vsub.f32 %v3332_v54, %v1195_v13  ;;  %v1224_v17 = vsub.f32 %v3336_v14, %v1197_v28 }
 0x557   :  { %v1242_v19 = vmul.f32 1.442695, %v1223_v16  ;;  %v1244_v30 = vmul.f32 1.442695, %v1224_v17 }
 0x558   :  { %v1199_v47 = vpop.xlane.xlu0 %1198  ;;  %v1201_v22 = vpop.xlane.xlu1 %1200 }
 0x559   :  { %2671 = vpow2.f32 %v1242_v19  ;;  %v1225_v31 = vsub.f32 %v3348_v5, %v1199_v47  ;;  %v1226_v25 = vsub.f32 %v3344_v6, %v1201_v22 }
 0x55a   :  { %v2666_v27 = vpop.eup %2665  ;;  %2673 = vpow2.f32 %v1244_v30 }
 0x55b   :  { %v2668_v40 = vpop.eup %2667  ;;  %v1246_v34 = vmul.f32 1.442695, %v1225_v31  ;;  %v1248_v35 = vmul.f32 1.442695, %v1226_v25  ;;  %1270 = vadd.xlane.f32.xlu0 %v2666_v27 }
 0x55c   :  { %v1203_v36 = vpop.xlane.xlu0 %1202  ;;  %1268 = vadd.xlane.f32.xlu1 %v2668_v40  ;;  %v1205_v54 = vpop.xlane.xlu1 %1204  ;;  %v1300_v1 = vpack.c.bf16 %v2666_v27, %v2668_v40 }
 0x55d   :  { %2675 = vpow2.f32 %v1246_v34  ;;  %v1227_v14 = vsub.f32 %v3356_v20, %v1203_v36  ;;  %v1228_v38 = vsub.f32 %v3360_v41, %v1205_v54 }
 0x55e   :  { %2677 = vpow2.f32 %v1248_v35  ;;  %2459 = vmatprep.mubr.bf16.mxu0 %v1300_v1 }
 0x55f   :  { %v2670_v5 = vpop.eup %2669  ;;  %v1250_v29 = vmul.f32 1.442695, %v1227_v14  ;;  %v1252_v6 = vmul.f32 1.442695, %v1228_v38  ;;  %v2593_v14 = vld [vmem:[#allocation10] sm:$0xff]   ;;  %v2594_v38 = vld [vmem:[#allocation10 + $0x8] sm:$0xff]  }
 0x560   :  { %v1207_v42 = vpop.xlane.xlu0 %1206  ;;  %1272 = vadd.xlane.f32.xlu1 %v2670_v5  ;;  %v1209_v11 = vpop.xlane.xlu1 %1208  ;;  %2475 = vmatprep.subr.bf16.mxu0 %v2593_v14 }
 0x561   :  { %2679 = vpow2.f32 %v1250_v29  ;;  %v1229_v45 = vsub.f32 %v3372_v37, %v1207_v42  ;;  %v1230_v43 = vsub.f32 %v3368_v61, %v1209_v11  ;;  %v2596_v29 = vld [vmem:[#allocation10 + $0x18] sm:$0xff]   ;;  %v2598_v42 = vld [vmem:[#allocation10 + $0x28] sm:$0xff]   ;;  %v2599_v11 = vld [vmem:[#allocation10 + $0x30] sm:$0xff]  }
 0x562   :  { %2681 = vpow2.f32 %v1252_v6  ;;  %v2597_v6 = vld [vmem:[#allocation10 + $0x20] sm:$0xff]  }
 0x563   :  { %v2672_v4 = vpop.eup %2671  ;;  %v1254_v55 = vmul.f32 1.442695, %v1229_v45  ;;  %v1256_v57 = vmul.f32 1.442695, %v1230_v43  ;;  %v2600_v45 = vld [vmem:[#allocation10 + $0x38] sm:$0xff]  }
 0x564   :  { %v2674_v20 = vpop.eup %2673  ;;  %v1211_v58 = vpop.xlane.xlu0 %1210  ;;  %1274 = vadd.xlane.f32.xlu0 %v2672_v4  ;;  %v1301_v59 = vpack.c.bf16 %v2672_v4, %v2670_v5  ;;  %v2595_v5 = vld [vmem:[#allocation10 + $0x10] sm:$0xff]  }
 0x565   :  { %v1213_v41 = vpop.xlane.xlu1 %1212  ;;  %2683 = vpow2.f32 %v1254_v55  ;;  %v1231_v62 = vsub.f32 %v3379_v44, %v1211_v58  ;;  %1276 = vadd.xlane.f32.xlu1 %v2674_v20 }
 0x566   :  { %v1232_v12 = vsub.f32 %v3383_v48, %v1213_v41  ;;  %2685 = vpow2.f32 %v1256_v57  ;;  %2460 = vmatmul.mubr.bf16.vlgmr.msra.gmra.mrb[48].mxu0 %v1301_v59 }
 0x567   :  { %v2676_v37 = vpop.eup %2675  ;;  %v1258_v56 = vmul.f32 1.442695, %v1231_v62  ;;  %2476 = vmatpush3.bf16.msra.mxu0 %v2593_v14 }
 0x568   :  { %v1260_v61 = vmul.f32 1.442695, %v1232_v12  ;;  %v2678_v8 = vpop.eup %2677  ;;  %v1215_v9 = vpop.xlane.xlu0 %1214  ;;  %1278 = vadd.xlane.f32.xlu0 %v2676_v37  ;;  %v1302_v13 = vpack.c.bf16 %v2676_v37, %v2674_v20  ;;  %2477 = vmatprep.subr.bf16.mxu0 %v2594_v38 }
 0x569   :  { %v1217_v23 = vpop.xlane.xlu1 %1216  ;;  %2687 = vpow2.f32 %v1258_v56  ;;  %v1233_v28 = vsub.f32 %v3393_v63, %v1215_v9  ;;  %1280 = vadd.xlane.f32.xlu1 %v2678_v8 }
 0x56a   :  { %v1234_v16 = vsub.f32 %v3389_v49, %v1217_v23  ;;  %2689 = vpow2.f32 %v1260_v61  ;;  %2463 = vmatprep.mubr.bf16.mxu0 %v1302_v13 }
 0x56b   :  { %v2680_v44 = vpop.eup %2679  ;;  %v1262_v48 = vmul.f32 1.442695, %v1233_v28  ;;  %2478 = vmatpush3.bf16.msra.mxu0 %v2594_v38 }
 0x56c   :  { %v1264_v17 = vmul.f32 1.442695, %v1234_v16  ;;  %v2682_v19 = vpop.eup %2681  ;;  %v1219_v30 = vpop.xlane.xlu0 %1218  ;;  %1282 = vadd.xlane.f32.xlu0 %v2680_v44  ;;  %v1303_v47 = vpack.c.bf16 %v2680_v44, %v2678_v8  ;;  %2479 = vmatprep.subr.bf16.mxu0 %v2595_v5  ;;  %v3421_v8 = vld [vmem:[%s3609_s9] ss:$0 sm:$0xff] }
 0x56d   :  { %2691 = vpow2.f32 %v1262_v48  ;;  %v1235_v22 = vsub.f32 %v3399_v52, %v1219_v30  ;;  %1284 = vadd.xlane.f32.xlu1 %v2682_v19 }
 0x56e   :  { %2693 = vpow2.f32 %v1264_v17  ;;  %2464 = vmatmul.mubr.bf16.gmra.mrb[52].mxu0 %v1303_v47 }
 0x56f   :  { %v2684_v31 = vpop.eup %2683  ;;  %v1266_v63 = vmul.f32 1.442695, %v1235_v22  ;;  %2480 = vmatpush3.bf16.msra.mxu0 %v2595_v5 }
 0x570   :  { %v2686_v25 = vpop.eup %2685  ;;  %1286 = vadd.xlane.f32.xlu0 %v2684_v31  ;;  %v1304_v49 = vpack.c.bf16 %v2684_v31, %v2682_v19  ;;  %2481 = vmatprep.subr.bf16.mxu0 %v2596_v29 }
 0x571   :  { %2695 = vpow2.f32 %v1266_v63  ;;  %1288 = vadd.xlane.f32.xlu1 %v2686_v25 }
 0x572   :  { %2467 = vmatprep.mubr.bf16.mxu0 %v1304_v49 }
 0x573   :  { %v2688_v27 = vpop.eup %2687  ;;  %2482 = vmatpush3.bf16.msra.mxu0 %v2596_v29 }
 0x574   :  { %v2690_v40 = vpop.eup %2689  ;;  %1290 = vadd.xlane.f32.xlu0 %v2688_v27  ;;  %v1305_v34 = vpack.c.bf16 %v2688_v27, %v2686_v25  ;;  %2483 = vmatprep.subr.bf16.mxu0 %v2597_v6 }
 0x575   :  { %1292 = vadd.xlane.f32.xlu1 %v2690_v40 }
 0x576   :  { %2468 = vmatmul.mubr.bf16.gmra.mrb[56].mxu0 %v1305_v34 }
 0x577   :  { %v2692_v35 = vpop.eup %2691  ;;  %2484 = vmatpush3.bf16.msra.mxu0 %v2597_v6 }
 0x578   :  { %v2694_v36 = vpop.eup %2693  ;;  %1294 = vadd.xlane.f32.xlu0 %v2692_v35  ;;  %v1306_v52 = vpack.c.bf16 %v2692_v35, %v2690_v40  ;;  %2485 = vmatprep.subr.bf16.mxu0 %v2598_v42 }
 0x579   :  { %1296 = vadd.xlane.f32.xlu1 %v2694_v36 }
 0x57a   :  { %2471 = vmatprep.mubr.bf16.mxu0 %v1306_v52 }
 0x57b   :  { %v2696_v54 = vpop.eup %2695  ;;  %2486 = vmatpush3.bf16.msra.mxu0 %v2598_v42 }
 0x57c   :  { %1298 = vadd.xlane.f32.xlu0 %v2696_v54  ;;  %v1307_v1 = vpack.c.bf16 %v2696_v54, %v2694_v36  ;;  %2487 = vmatprep.subr.bf16.mxu0 %v2599_v11 }
 0x57e   :  { %2472 = vmatmul.mubr.bf16.gmra.mrb[60].mxu0 %v1307_v1 }
 0x57f   :  { %2488 = vmatpush3.bf16.msra.mxu0 %v2599_v11 }
 0x580   :  { %2489 = vmatprep.subr.bf16.mxu0 %v2600_v45 }
 0x583   :  { %2490 = vmatpush3.bf16.msra.mxu0 %v2600_v45 }
 0x5e8   :  { %v1271_v4 = vpop.xlane.xlu0 %1270 }
 0x5e9   :  { %v1269_v43 = vpop.xlane.xlu1 %1268 }
 0x5ed   :  { %v1273_v55 = vpop.xlane.xlu1 %1272 }
 0x5ee   :  { %2697 = vrcp.f32 %v1273_v55 }
 0x5ef   :  { %2699 = vrcp.f32 %v1269_v43 }
 0x5f1   :  { %v1275_v57 = vpop.xlane.xlu0 %1274 }
 0x5f2   :  { %v1277_v20 = vpop.xlane.xlu1 %1276  ;;  %2701 = vrcp.f32 %v1275_v57 }
 0x5f3   :  { %2703 = vrcp.f32 %v1271_v4 }
 0x5f5   :  { %v1279_v58 = vpop.xlane.xlu0 %1278 }
 0x5f6   :  { %v1281_v41 = vpop.xlane.xlu1 %1280 }
 0x5f7   :  { %2705 = vrcp.f32 %v1281_v41 }
 0x5f8   :  { %2707 = vrcp.f32 %v1277_v20  ;;  %v2698_v56 = vpop.eup %2697 }
 0x5f9   :  { %v1283_v59 = vpop.xlane.xlu0 %1282  ;;  %v2700_v9 = vpop.eup %2699 }
 0x5fa   :  { %v1285_v62 = vpop.xlane.xlu1 %1284  ;;  %2709 = vrcp.f32 %v1283_v59 }
 0x5fb   :  { %2711 = vrcp.f32 %v1279_v58 }
 0x5fc   :  { %v2702_v16 = vpop.eup %2701 }
 0x5fd   :  { %v1287_v12 = vpop.xlane.xlu0 %1286  ;;  %v2704_v17 = vpop.eup %2703 }
 0x5fe   :  { %v1289_v37 = vpop.xlane.xlu1 %1288 }
 0x5ff   :  { %2713 = vrcp.f32 %v1289_v37 }
 0x600   :  { %2715 = vrcp.f32 %v1285_v62 }
 0x601   :  { %v1291_v23 = vpop.xlane.xlu0 %1290  ;;  %v2706_v35 = vpop.eup %2705 }
 0x602   :  { %v1293_v63 = vpop.xlane.xlu1 %1292  ;;  %2717 = vrcp.f32 %v1291_v23  ;;  %v2708_v1 = vpop.eup %2707 }
 0x603   :  { %2719 = vrcp.f32 %v1287_v12 }
 0x604   :  { %v2710_v29 = vpop.eup %2709 }
 0x605   :  { %v1295_v27 = vpop.xlane.xlu0 %1294  ;;  %v2712_v45 = vpop.eup %2711 }
 0x606   :  { %v1297_v43 = vpop.xlane.xlu1 %1296 }
 0x607   :  { %2721 = vrcp.f32 %v1297_v43 }
 0x608   :  { %2723 = vrcp.f32 %v1293_v63 }
 0x609   :  { %v1299_v41 = vpop.xlane.xlu0 %1298 }
 0x60a   :  { %2725 = vrcp.f32 %v1299_v41 }
 0x60b   :  { %2727 = vrcp.f32 %v1295_v27 }
 0x639   :  { %v2461_v61 = vpop.f32.mrb[48].mxu0 }
 0x63a   :  { %v1431_v13 = vmul.f32 %v2698_v56, %v2461_v61  ;;  %v1350_v28 = vpop.f32.mrb[49].mxu0  ;;  %v2714_v56 = vpop.eup %2713 }
 0x63b   :  { %v1429_v44 = vmul.f32 %v2700_v9, %v1350_v28  ;;  %v2462_v48 = vpop.f32.mrb[50].mxu0 }
 0x63c   :  { %v1454_v19 = vadd.f32 %v3421_v8, %v1431_v13  ;;  %v1432_v30 = vmul.f32 %v2702_v16, %v2462_v48  ;;  %v1353_v47 = vpop.f32.mrb[51].mxu0  ;;  %v2716_v13 = vpop.eup %2715 }
 0x63d   :  { %v1452_v22 = vadd.f32 %v3421_v8, %v1429_v44  ;;  %v1430_v31 = vmul.f32 %v2704_v17, %v1353_v47  ;;  %v2718_v48 = vpop.eup %2717 }
 0x63e   :  { %v1455_v25 = vadd.f32 %v3421_v8, %v1432_v30  ;;  %v1470_v40 = vmax.f32 %v1454_v19, 0.0  ;;  %v2720_v47 = vpop.eup %2719 }
 0x63f   :  { %v1453_v49 = vadd.f32 %v3421_v8, %v1430_v31  ;;  %v1468_v36 = vmax.f32 %v1452_v22, 0.0 }
 0x640   :  { %v1471_v34 = vmax.f32 %v1455_v25, 0.0 }
 0x641   :  { %v1469_v52 = vmax.f32 %v1453_v49, 0.0  ;;  %v2465_v54 = vpop.f32.mrb[52].mxu0 }
 0x642   :  { %v1485_v14 = vpack.c.bf16 %v1471_v34, %v1470_v40  ;;  %v1435_v38 = vmul.f32 %v2706_v35, %v2465_v54  ;;  %v1366_v5 = vpop.f32.mrb[53].mxu0 }
 0x643   :  { %v1433_v6 = vmul.f32 %v2708_v1, %v1366_v5  ;;  %v2466_v42 = vpop.f32.mrb[54].mxu0  ;;  %v1484_v11 = vpack.c.bf16 %v1469_v52, %v1468_v36  ;;  %v2722_v36 = vpop.eup %2721 }
 0x644   :  { %v1458_v4 = vadd.f32 %v3421_v8, %v1435_v38  ;;  %v1436_v55 = vmul.f32 %v2710_v29, %v2466_v42  ;;  %v1369_v57 = vpop.f32.mrb[55].mxu0  ;;  %v2724_v38 = vpop.eup %2723 }
 0x645   :  { %v1456_v20 = vadd.f32 %v3421_v8, %v1433_v6  ;;  %v1434_v58 = vmul.f32 %v2712_v45, %v1369_v57  ;;  %2491 = vmatprep.mubr.bf16.mxu0 %v1484_v11  ;;  %2508 = vmatpush3.bf16.xpose.msra.mxu1 %v1484_v11  ;;  %v2726_v42 = vpop.eup %2725 }
 0x646   :  { %v1459_v59 = vadd.f32 %v3421_v8, %v1436_v55  ;;  %2492 = vmatmul.mubr.bf16.vlgmr.msra.gmra.mrb[64].mxu0 %v1485_v14  ;;  %2509 = vmatprep.subr.bf16.mxu1 %v2942_v0  ;;  %v1474_v12 = vmax.f32 %v1458_v4, 0.0  ;;  %v2728_v43 = vpop.eup %2727 }
 0x647   :  { %v1457_v62 = vadd.f32 %v3421_v8, %v1434_v58  ;;  %v1472_v61 = vmax.f32 %v1456_v20, 0.0 }
 0x648   :  { %v1475_v37 = vmax.f32 %v1459_v59, 0.0 }
 0x649   :  { %v1473_v9 = vmax.f32 %v1457_v62, 0.0  ;;  %v2469_v23 = vpop.f32.mrb[56].mxu0 }
 0x64a   :  { %v1439_v28 = vmul.f32 %v2714_v56, %v2469_v23  ;;  %v1382_v16 = vpop.f32.mrb[57].mxu0  ;;  %v1487_v44 = vpack.c.bf16 %v1475_v37, %v1474_v12  ;;  %v2945_v23 = vmov 8  }
 0x64b   :  { %v1437_v17 = vmul.f32 %v2716_v13, %v1382_v16  ;;  %v2470_v19 = vpop.f32.mrb[58].mxu0  ;;  %v1486_v30 = vpack.c.bf16 %v1473_v9, %v1472_v61  ;;  %2575 = vset.pattern.permute.xlu1 %v2945_v23  ;;  %2576 = vset.pattern.permute.xlu0 %v2945_v23 }
 0x64c   :  { %v1462_v22 = vadd.f32 %v3421_v8, %v1439_v28  ;;  %v1440_v31 = vmul.f32 %v2718_v48, %v2470_v19  ;;  %v1385_v63 = vpop.f32.mrb[59].mxu0 }
 0x64d   :  { %v1460_v25 = vadd.f32 %v3421_v8, %v1437_v17  ;;  %v1438_v49 = vmul.f32 %v2720_v47, %v1385_v63  ;;  %2495 = vmatprep.mubr.bf16.mxu0 %v1486_v30  ;;  %2510 = vmatpush3.bf16.xpose.msra.mxu1 %v1485_v14 }
 0x64e   :  { %v1463_v40 = vadd.f32 %v3421_v8, %v1440_v31  ;;  %2496 = vmatmul.mubr.bf16.gmra.mrb[68].mxu0 %v1487_v44  ;;  %2511 = vmatprep.subr.bf16.mxu1 %v2942_v0  ;;  %v1478_v34 = vmax.f32 %v1462_v22, 0.0 }
 0x64f   :  { %v1461_v27 = vadd.f32 %v3421_v8, %v1438_v49  ;;  %v1476_v52 = vmax.f32 %v1460_v25, 0.0 }
 0x650   :  { %v1479_v35 = vmax.f32 %v1463_v40, 0.0 }
 0x651   :  { %v1477_v54 = vmax.f32 %v1461_v27, 0.0  ;;  %v2473_v1 = vpop.f32.mrb[60].mxu0 }
 0x652   :  { %v1443_v5 = vmul.f32 %v2722_v36, %v2473_v1  ;;  %v1398_v29 = vpop.f32.mrb[61].mxu0  ;;  %v1489_v6 = vpack.c.bf16 %v1479_v35, %v1478_v34 }
 0x653   :  { %v1441_v11 = vmul.f32 %v2724_v38, %v1398_v29  ;;  %v2474_v14 = vpop.f32.mrb[62].mxu0  ;;  %v1488_v45 = vpack.c.bf16 %v1477_v54, %v1476_v52 }
 0x654   :  { %v1466_v4 = vadd.f32 %v3421_v8, %v1443_v5  ;;  %v1444_v55 = vmul.f32 %v2726_v42, %v2474_v14  ;;  %v1401_v57 = vpop.f32.mrb[63].mxu0 }
 0x655   :  { %v1464_v20 = vadd.f32 %v3421_v8, %v1441_v11  ;;  %v1442_v58 = vmul.f32 %v2728_v43, %v1401_v57  ;;  %2499 = vmatprep.mubr.bf16.mxu0 %v1488_v45  ;;  %2512 = vmatpush3.bf16.xpose.msra.mxu1 %v1486_v30 }
 0x656   :  { %v1467_v41 = vadd.f32 %v3421_v8, %v1444_v55  ;;  %2500 = vmatmul.mubr.bf16.gmra.mrb[72].mxu0 %v1489_v6  ;;  %2513 = vmatprep.subr.bf16.mxu1 %v2942_v0  ;;  %v1482_v62 = vmax.f32 %v1466_v4, 0.0 }
 0x657   :  { %v1465_v59 = vadd.f32 %v3421_v8, %v1442_v58  ;;  %v1480_v37 = vmax.f32 %v1464_v20, 0.0  ;;  %v1653_v8 = vld [vmem:[%s3607_s7] sm:$0x1] }
 0x658   :  { %v1483_v12 = vmax.f32 %v1467_v41, 0.0 }
 0x659   :  { %v1481_v56 = vmax.f32 %v1465_v59, 0.0 }
 0x65a   :  { %v1491_v61 = vpack.c.bf16 %v1483_v12, %v1482_v62 }
 0x65b   :  { %v1490_v9 = vpack.c.bf16 %v1481_v56, %v1480_v37 }
 0x65d   :  { %2503 = vmatprep.mubr.bf16.mxu0 %v1490_v9  ;;  %2514 = vmatpush3.bf16.xpose.msra.mxu1 %v1487_v44 }
 0x65e   :  { %2504 = vmatmul.mubr.bf16.gmra.mrb[76].mxu0 %v1491_v61  ;;  %2515 = vmatprep.subr.bf16.mxu1 %v2942_v0 }
 0x665   :  { %2516 = vmatpush3.bf16.xpose.msra.mxu1 %v1488_v45 }
 0x666   :  { %2517 = vmatprep.subr.bf16.mxu1 %v2942_v0 }
 0x66d   :  { %2518 = vmatpush3.bf16.xpose.msra.mxu1 %v1489_v6 }
 0x66e   :  { %2519 = vmatprep.subr.bf16.mxu1 %v2942_v0 }
 0x675   :  { %2520 = vmatpush3.bf16.xpose.msra.mxu1 %v1490_v9 }
 0x676   :  { %2521 = vmatprep.subr.bf16.mxu1 %v2942_v0 }
 0x67d   :  { %2522 = vmatpush3.bf16.xpose.msra.mxu1 %v1491_v61 }
 0x684   :  { %2524 = vmatmul.mubr.bf16.vlgmr.msra.gmra.mrb[8].mxu1 %v1653_v8 }
 0x719   :  { %v2493_v13 = vpop.f32.mrb[64].mxu0 }
 0x71a   :  { %v1590_v28 = vpop.f32.mrb[65].mxu0 }
 0x71b   :  { %1696 = vperm.xlu1 %2575, %v1590_v28   ;;  %v2494_v16 = vpop.f32.mrb[66].mxu0 }
 0x71c   :  { %v1963_v44 = vpack.c.bf16 %v2494_v16, %v2493_v13  ;;  %v1593_v48 = vpop.f32.mrb[67].mxu0 }
 0x71d   :  { %v1962_v17 = vpack.c.bf16 %v1593_v48, %v1590_v28  ;;  %1701 = vperm.xlu0 %2576, %v1593_v48  }
 0x71f   :  { %1706 = vperm.xlu1 %2575, %v2493_v13   ;;  %2527 = vmatprep.subr.bf16.mxu0 %v1962_v17 }
 0x720   :  { %2528 = vmatpush3.bf16.msra.mxu0 %v1962_v17 }
 0x721   :  { %v2497_v0 = vpop.f32.mrb[68].mxu0  ;;  %2529 = vmatprep.subr.bf16.mxu0 %v1963_v44 }
 0x722   :  { %v1606_v19 = vpop.f32.mrb[69].mxu0 }
 0x723   :  { %1711 = vperm.xlu1 %2575, %v2494_v16   ;;  %v2498_v30 = vpop.f32.mrb[70].mxu0 }
 0x724   :  { %v1965_v47 = vpack.c.bf16 %v2498_v30, %v2497_v0  ;;  %v1609_v22 = vpop.f32.mrb[71].mxu0  ;;  %2530 = vmatpush3.bf16.msra.mxu0 %v1963_v44 }
 0x725   :  { %v1964_v31 = vpack.c.bf16 %v1609_v22, %v1606_v19 }
 0x727   :  { %1726 = vperm.xlu1 %2575, %v2497_v0   ;;  %2531 = vmatprep.subr.bf16.mxu0 %v1964_v31 }
 0x728   :  { %2532 = vmatpush3.bf16.msra.mxu0 %v1964_v31 }
 0x729   :  { %v2501_v63 = vpop.f32.mrb[72].mxu0  ;;  %2533 = vmatprep.subr.bf16.mxu0 %v1965_v47 }
 0x72a   :  { %1746 = vperm.xlu0 %2576, %v2501_v63   ;;  %v1622_v25 = vpop.f32.mrb[73].mxu0 }
 0x72b   :  { %1716 = vperm.xlu1 %2575, %v1606_v19   ;;  %v2502_v49 = vpop.f32.mrb[74].mxu0 }
 0x72c   :  { %v1967_v40 = vpack.c.bf16 %v2502_v49, %v2501_v63  ;;  %v1625_v27 = vpop.f32.mrb[75].mxu0  ;;  %2534 = vmatpush3.bf16.msra.mxu0 %v1965_v47 }
 0x72d   :  { %v1966_v34 = vpack.c.bf16 %v1625_v27, %v1622_v25 }
 0x72f   :  { %1731 = vperm.xlu1 %2575, %v2498_v30   ;;  %2535 = vmatprep.subr.bf16.mxu0 %v1966_v34 }
 0x730   :  { %2536 = vmatpush3.bf16.msra.mxu0 %v1966_v34 }
 0x731   :  { %v2505_v35 = vpop.f32.mrb[76].mxu0  ;;  %2537 = vmatprep.subr.bf16.mxu0 %v1967_v40 }
 0x732   :  { %1766 = vperm.xlu0 %2576, %v2505_v35   ;;  %v1638_v36 = vpop.f32.mrb[77].mxu0 }
 0x733   :  { %1721 = vperm.xlu1 %2575, %v1609_v22   ;;  %v2506_v52 = vpop.f32.mrb[78].mxu0 }
 0x734   :  { %v1969_v54 = vpack.c.bf16 %v2506_v52, %v2505_v35  ;;  %v1641_v1 = vpop.f32.mrb[79].mxu0  ;;  %2538 = vmatpush3.bf16.msra.mxu0 %v1967_v40 }
 0x735   :  { %v1968_v38 = vpack.c.bf16 %v1641_v1, %v1638_v36 }
 0x736   :  { %1756 = vperm.xlu0 %2576, %v1638_v36  }
 0x737   :  { %1736 = vperm.xlu1 %2575, %v1622_v25   ;;  %2539 = vmatprep.subr.bf16.mxu0 %v1968_v38 }
 0x738   :  { %2540 = vmatpush3.bf16.msra.mxu0 %v1968_v38 }
 0x739   :  { %2541 = vmatprep.subr.bf16.mxu0 %v1969_v54 }
 0x73b   :  { %1741 = vperm.xlu1 %2575, %v1625_v27  }
 0x73c   :  { %2542 = vmatpush3.bf16.msra.mxu0 %v1969_v54 }
 0x73f   :  { %1751 = vperm.xlu1 %2575, %v2502_v49  }
 0x743   :  { %1761 = vperm.xlu1 %2575, %v1641_v1  }
 0x747   :  { %1771 = vperm.xlu1 %2575, %v2506_v52  }
 0x757   :  { %v1688_v5 = vpop.f32.mrb[8].mxu1 }
 0x758   :  { %v2525_v29 = vpop.f32.mrb[9].mxu1  ;;  %v3450_v11 = vrot.slane %v1688_v5, %v3098_v2 }
 0x759   :  { %v1691_v6 = vpop.f32.mrb[10].mxu1 }
 0x75a   :  { %v2526_v42 = vpop.f32.mrb[11].mxu1 }
 0x79a   :  { %v1697_v14 = vpop.permute.xlu1 %1696 }
 0x79b   :  { %v1778_v45 = vadd.f32 %v3450_v11, %v1697_v14 }
 0x79c   :  { %v1702_v43 = vpop.permute.xlu0 %1701 }
 0x79d   :  { %v1794_v4 = vmul.f32 0.2, %v1778_v45  ;;  %v1779_v55 = vadd.f32 %v3450_v11, %v1702_v43 }
 0x79e   :  { %v1707_v57 = vpop.permute.xlu1 %1706 }
 0x79f   :  { %v1810_v20 = vmax.f32 %v1778_v45, %v1794_v4  ;;  %v1795_v58 = vmul.f32 0.2, %v1779_v55  ;;  %v1780_v41 = vadd.f32 %v3450_v11, %v1707_v57 }
 0x7a1   :  { %v1811_v59 = vmax.f32 %v1779_v55, %v1795_v58  ;;  %v1796_v62 = vmul.f32 0.2, %v1780_v41  ;;  %v3457_v12 = vsel %vm502_vm1, %v1810_v20, -1e+30  ;;  %vm3614_vm1 = vmmov %vm3613_vm0 }
 0x7a2   :  { %v1712_v2 = vpop.permute.xlu1 %1711  ;;  %1842 = vmax.xlane.f32.xlu0 %v3457_v12 }
 0x7a3   :  { %v1812_v37 = vmax.f32 %v1780_v41, %v1796_v62  ;;  %v1781_v56 = vadd.f32 %v3450_v11, %v1712_v2  ;;  %v3463_v61 = vsel %vm503_vm3, %v1811_v59, -1e+30 }
 0x7a4   :  { %1844 = vmax.xlane.f32.xlu1 %v3463_v61 }
 0x7a5   :  { %v1797_v9 = vmul.f32 0.2, %v1781_v56  ;;  %v3468_v8 = vsel %vm504_vm2, %v1812_v37, -1e+30 }
 0x7a6   :  { %v1727_v10 = vpop.permute.xlu1 %1726  ;;  %1846 = vmax.xlane.f32.xlu0 %v3468_v8 }
 0x7a7   :  { %v1813_v23 = vmax.f32 %v1781_v56, %v1797_v9  ;;  %v1784_v13 = vadd.f32 %v3450_v11, %v1727_v10 }
 0x7a9   :  { %v3474_v28 = vsel %vm505_vm4, %v1813_v23, -1e+30  ;;  %v1800_v44 = vmul.f32 0.2, %v1784_v13  ;;  %v1747_v48 = vpop.permute.xlu0 %1746 }
 0x7aa   :  { %v1717_v21 = vpop.permute.xlu1 %1716  ;;  %1848 = vmax.xlane.f32.xlu0 %v3474_v28  ;;  %v1788_v63 = vadd.f32 %v3450_v11, %v1747_v48 }
 0x7ab   :  { %v1782_v16 = vadd.f32 %v3450_v11, %v1717_v21  ;;  %v1816_v30 = vmax.f32 %v1784_v13, %v1800_v44 }
 0x7ac   :  { %v1804_v36 = vmul.f32 0.2, %v1788_v63 }
 0x7ad   :  { %v1798_v18 = vmul.f32 0.2, %v1782_v16  ;;  %v3488_v40 = vsel %vm508_vm7, %v1816_v30, -1e+30 }
 0x7ae   :  { %v1732_v17 = vpop.permute.xlu1 %1731  ;;  %v1820_v6 = vmax.f32 %v1788_v63, %v1804_v36 }
 0x7af   :  { %v1814_v0 = vmax.f32 %v1782_v16, %v1798_v18  ;;  %v1785_v19 = vadd.f32 %v3450_v11, %v1732_v17 }
 0x7b0   :  { %v3513_v53 = vsel %vm512_vm11, %v1820_v6, -1e+30 }
 0x7b1   :  { %v1767_v47 = vpop.permute.xlu0 %1766  ;;  %v3481_v22 = vsel %vm506_vm5, %v1814_v0, -1e+30  ;;  %v1801_v25 = vmul.f32 0.2, %v1785_v19 }
 0x7b2   :  { %v1722_v26 = vpop.permute.xlu1 %1721  ;;  %1850 = vmax.xlane.f32.xlu1 %v3481_v22  ;;  %v1792_v14 = vadd.f32 %v3450_v11, %v1767_v47 }
 0x7b3   :  { %v1783_v31 = vadd.f32 %v3450_v11, %v1722_v26  ;;  %v1817_v52 = vmax.f32 %v1785_v19, %v1801_v25 }
 0x7b4   :  { %v1808_v20 = vmul.f32 0.2, %v1792_v14 }
 0x7b5   :  { %v1799_v49 = vmul.f32 0.2, %v1783_v31  ;;  %v1757_v27 = vpop.permute.xlu0 %1756  ;;  %v3501_v42 = vsel %vm509_vm8, %v1817_v52, -1e+30 }
 0x7b6   :  { %v1737_v34 = vpop.permute.xlu1 %1736  ;;  %1854 = vmax.xlane.f32.xlu1 %v3488_v40  ;;  %v1790_v54 = vadd.f32 %v3450_v11, %v1757_v27  ;;  %v1824_v37 = vmax.f32 %v1792_v14, %v1808_v20 }
 0x7b7   :  { %v1815_v32 = vmax.f32 %v1783_v31, %v1799_v49  ;;  %v1786_v35 = vadd.f32 %v3450_v11, %v1737_v34 }
 0x7b8   :  { %v1806_v45 = vmul.f32 0.2, %v1790_v54  ;;  %v3535_v21 = vsel %vm516_vm14, %v1824_v37, -1e+30 }
 0x7b9   :  { %v1802_v1 = vmul.f32 0.2, %v1786_v35  ;;  %v3495_v38 = vsel %vm507_vm6, %v1815_v32, -1e+30 }
 0x7ba   :  { %v1742_v5 = vpop.permute.xlu1 %1741  ;;  %1852 = vmax.xlane.f32.xlu0 %v3495_v38  ;;  %v1822_v58 = vmax.f32 %v1790_v54, %v1806_v45 }
 0x7bb   :  { %v1818_v46 = vmax.f32 %v1786_v35, %v1802_v1  ;;  %v1787_v29 = vadd.f32 %v3450_v11, %v1742_v5 }
 0x7bc   :  { %v3528_v9 = vsel %vm3614_vm1, %v1822_v58, -1e+30 }
 0x7bd   :  { %v1803_v43 = vmul.f32 0.2, %v1787_v29  ;;  %v3506_v39 = vsel %vm510_vm9, %v1818_v46, -1e+30 }
 0x7be   :  { %v1752_v4 = vpop.permute.xlu1 %1751  ;;  %1856 = vmax.xlane.f32.xlu0 %v3501_v42  ;;  %1858 = vmax.xlane.f32.xlu1 %v3506_v39 }
 0x7bf   :  { %v1819_v55 = vmax.f32 %v1787_v29, %v1803_v43  ;;  %v1789_v57 = vadd.f32 %v3450_v11, %v1752_v4 }
 0x7c1   :  { %v1805_v41 = vmul.f32 0.2, %v1789_v57  ;;  %v3517_v60 = vsel %vm511_vm10, %v1819_v55, -1e+30 }
 0x7c2   :  { %1860 = vmax.xlane.f32.xlu0 %v3517_v60  ;;  %1862 = vmax.xlane.f32.xlu1 %v3513_v53  ;;  %v1762_v59 = vpop.permute.xlu1 %1761 }
 0x7c3   :  { %v1821_v62 = vmax.f32 %v1789_v57, %v1805_v41  ;;  %v1791_v2 = vadd.f32 %v3450_v11, %v1762_v59 }
 0x7c5   :  { %v1807_v56 = vmul.f32 0.2, %v1791_v2  ;;  %v3524_v15 = vsel %vm513_vm12, %v1821_v62, -1e+30 }
 0x7c6   :  { %1864 = vmax.xlane.f32.xlu0 %v3524_v15  ;;  %1866 = vmax.xlane.f32.xlu1 %v3528_v9  ;;  %v1772_v7 = vpop.permute.xlu1 %1771 }
 0x7c7   :  { %v1823_v10 = vmax.f32 %v1791_v2, %v1807_v56  ;;  %v1793_v23 = vadd.f32 %v3450_v11, %v1772_v7 }
 0x7c9   :  { %v1809_v13 = vmul.f32 0.2, %v1793_v23  ;;  %v3539_v24 = vsel %vm515_vm15, %v1823_v10, -1e+30 }
 0x7ca   :  { %1870 = vmax.xlane.f32.xlu1 %v3535_v21  ;;  %1868 = vmax.xlane.f32.xlu0 %v3539_v24 }
 0x7cb   :  { %v1825_v33 = vmax.f32 %v1793_v23, %v1809_v13 }
 0x7cd   :  { %v3545_v16 = vsel %vm517_vm13, %v1825_v33, -1e+30 }
 0x7ce   :  { %1872 = vmax.xlane.f32.xlu0 %v3545_v16 }
 0x82f   :  { %v1843_v11 = vpop.xlane.xlu0 %1842 }
 0x830   :  { %v1874_v50 = vsub.f32 %v3457_v12, %v1843_v11 }
 0x831   :  { %v1845_v44 = vpop.xlane.xlu1 %1844 }
 0x832   :  { %v1890_v48 = vmul.f32 1.442695, %v1874_v50  ;;  %v1875_v51 = vsub.f32 %v3463_v61, %v1845_v44 }
 0x833   :  { %v1847_v18 = vpop.xlane.xlu0 %1846 }
 0x834   :  { %v1892_v17 = vmul.f32 1.442695, %v1875_v51  ;;  %v1876_v0 = vsub.f32 %v3468_v8, %v1847_v18  ;;  %2729 = vpow2.f32 %v1890_v48 }
 0x836   :  { %2731 = vpow2.f32 %v1892_v17  ;;  %v1894_v19 = vmul.f32 1.442695, %v1876_v0 }
 0x837   :  { %v1849_v30 = vpop.xlane.xlu0 %1848 }
 0x838   :  { %2733 = vpow2.f32 %v1894_v19  ;;  %v1877_v3 = vsub.f32 %v3474_v28, %v1849_v30 }
 0x83a   :  { %v1896_v47 = vmul.f32 1.442695, %v1877_v3 }
 0x83c   :  { %2735 = vpow2.f32 %v1896_v47 }
 0x83e   :  { %v2730_v26 = vpop.eup %2729 }
 0x83f   :  { %v1851_v31 = vpop.xlane.xlu1 %1850 }
 0x840   :  { %v2732_v12 = vpop.eup %2731  ;;  %v1878_v61 = vsub.f32 %v3481_v22, %v1851_v31 }
 0x841   :  { %v1954_v63 = vpack.c.bf16 %v2732_v12, %v2730_v26 }
 0x842   :  { %v2734_v25 = vpop.eup %2733  ;;  %v1898_v32 = vmul.f32 1.442695, %v1878_v61  ;;  %v3567_v61 = vld [vmem:[%s3610_s10] ss:$0 sm:$0xff]  ;;  %s2946_s10 = smov [#allocation11]  }
 0x843   :  { %1926 = vadd.xlane.f32.xlu1 %v2734_v25  ;;  %2543 = vmatprep.mubr.bf16.mxu0 %v1954_v63  ;;  %v1855_v49 = vpop.xlane.xlu1 %1854  ;;  %s2143_s14 = sshll.u32 %s2946_s10, 4  ;;  %s2144_s14 = int_to_ptr.vmem [resolvable:$true] %s2143_s14 }
 0x844   :  { %v1880_v8 = vsub.f32 %v3488_v40, %v1855_v49  ;;  %s2903_s16 = scalar_lea.vmem %s2144_s14, 2048  ;;  %p2908_p13 = scmp.lt.s32.totalorder %s2144_s14, %s2144_s14 }
 0x845   :  { %p2904_p12 = scmp.ne.s32.totalorder %s2144_s14, %s2903_s16  ;;  %p2909_p0 = scmp.lt.s32.totalorder %s2903_s16, %s2903_s16 }
 0x846   :  { %v2736_v27 = vpop.eup %2735  ;;  %v1902_v34 = vmul.f32 1.442695, %v1880_v8 }
 0x847   :  { %v1853_v35 = vpop.xlane.xlu0 %1852  ;;  %1922 = vadd.xlane.f32.xlu1 %v2730_v26  ;;  %1928 = vadd.xlane.f32.xlu0 %v2736_v27  ;;  %v1955_v28 = vpack.c.bf16 %v2736_v27, %v2734_v25  ;;  %p2910_p1 = por %p2909_p0, %p2908_p13 }
 0x848   :  { %2737 = vpow2.f32 %v1902_v34  ;;  %v1879_v36 = vsub.f32 %v3495_v38, %v1853_v35 }
 0x849   :  { %2544 = vmatmul.mubr.bf16.vlgmr.msra.gmra.mrb[80].mxu0 %v1955_v28  ;;  %2739 = vpow2.f32 %v1898_v32  ;;  %p2911_p2 = pnand %p2910_p1, %p2904_p12 }
 0x84a   :  { %v1900_v52 = vmul.f32 1.442695, %v1879_v36 }
 0x84b   :  { %v1857_v54 = vpop.xlane.xlu0 %1856  ;;  %1924 = vadd.xlane.f32.xlu0 %v2732_v12  ;;  %v1859_v22 = vpop.xlane.xlu1 %1858 }
 0x84c   :  { %2741 = vpow2.f32 %v1900_v52  ;;  %v1881_v1 = vsub.f32 %v3501_v42, %v1857_v54  ;;  %v1882_v40 = vsub.f32 %v3506_v39, %v1859_v22 }
 0x84e   :  { %v1904_v5 = vmul.f32 1.442695, %v1881_v1  ;;  %v1906_v46 = vmul.f32 1.442695, %v1882_v40 }
 0x84f   :  { %v1861_v29 = vpop.xlane.xlu0 %1860  ;;  %v1863_v6 = vpop.xlane.xlu1 %1862 }
 0x850   :  { %2743 = vpow2.f32 %v1904_v5  ;;  %v1883_v14 = vsub.f32 %v3517_v60, %v1861_v29  ;;  %v1884_v38 = vsub.f32 %v3513_v53, %v1863_v6 }
 0x851   :  { %2745 = vpow2.f32 %v1906_v46 }
 0x852   :  { %v2738_v45 = vpop.eup %2737  ;;  %v1908_v43 = vmul.f32 1.442695, %v1883_v14  ;;  %v1910_v4 = vmul.f32 1.442695, %v1884_v38 }
 0x853   :  { %v1865_v55 = vpop.xlane.xlu0 %1864  ;;  %1934 = vadd.xlane.f32.xlu1 %v2738_v45  ;;  %v1867_v57 = vpop.xlane.xlu1 %1866 }
 0x854   :  { %2747 = vpow2.f32 %v1908_v43  ;;  %v1885_v42 = vsub.f32 %v3524_v15, %v1865_v55  ;;  %v1886_v39 = vsub.f32 %v3528_v9, %v1867_v57  ;;  %v2740_v20 = vpop.eup %2739 }
 0x855   :  { %2749 = vpow2.f32 %v1910_v4 }
 0x856   :  { %v2742_v58 = vpop.eup %2741  ;;  %v1912_v41 = vmul.f32 1.442695, %v1885_v42  ;;  %v1914_v59 = vmul.f32 1.442695, %v1886_v39 }
 0x857   :  { %v1869_v60 = vpop.xlane.xlu0 %1868  ;;  %1930 = vadd.xlane.f32.xlu1 %v2740_v20  ;;  %v1871_v53 = vpop.xlane.xlu1 %1870  ;;  %v1956_v62 = vpack.c.bf16 %v2742_v58, %v2740_v20 }
 0x858   :  { %2751 = vpow2.f32 %v1912_v41  ;;  %v1887_v2 = vsub.f32 %v3539_v24, %v1869_v60  ;;  %v1888_v37 = vsub.f32 %v3535_v21, %v1871_v53 }
 0x859   :  { %2547 = vmatprep.mubr.bf16.mxu0 %v1956_v62  ;;  %2753 = vpow2.f32 %v1914_v59 }
 0x85a   :  { %v2744_v56 = vpop.eup %2743  ;;  %v1916_v7 = vmul.f32 1.442695, %v1887_v2  ;;  %v1918_v15 = vmul.f32 1.442695, %v1888_v37 }
 0x85b   :  { %v1873_v9 = vpop.xlane.xlu0 %1872  ;;  %1936 = vadd.xlane.f32.xlu0 %v2744_v56  ;;  %v1957_v10 = vpack.c.bf16 %v2744_v56, %v2738_v45  ;;  %v2746_v13 = vpop.eup %2745 }
 0x85c   :  { %2755 = vpow2.f32 %v1916_v7  ;;  %v1889_v23 = vsub.f32 %v3545_v16, %v1873_v9 }
 0x85d   :  { %2548 = vmatmul.mubr.bf16.gmra.mrb[84].mxu0 %v1957_v10  ;;  %2757 = vpow2.f32 %v1918_v15 }
 0x85e   :  { %v2748_v33 = vpop.eup %2747  ;;  %v1920_v11 = vmul.f32 1.442695, %v1889_v23 }
 0x85f   :  { %v2750_v50 = vpop.eup %2749  ;;  %1932 = vadd.xlane.f32.xlu0 %v2742_v58  ;;  %v1958_v24 = vpack.c.bf16 %v2748_v33, %v2746_v13 }
 0x860   :  { %2759 = vpow2.f32 %v1920_v11  ;;  %1942 = vadd.xlane.f32.xlu1 %v2750_v50 }
 0x861   :  { %2551 = vmatprep.mubr.bf16.mxu0 %v1958_v24 }
 0x862   :  { %v2752_v21 = vpop.eup %2751 }
 0x863   :  { %1944 = vadd.xlane.f32.xlu0 %v2752_v21  ;;  %v1959_v44 = vpack.c.bf16 %v2752_v21, %v2750_v50  ;;  %v2754_v48 = vpop.eup %2753 }
 0x864   :  { %1938 = vadd.xlane.f32.xlu1 %v2746_v13 }
 0x865   :  { %2552 = vmatmul.mubr.bf16.gmra.mrb[88].mxu0 %v1959_v44 }
 0x866   :  { %v2756_v51 = vpop.eup %2755 }
 0x867   :  { %1940 = vadd.xlane.f32.xlu0 %v2748_v33  ;;  %v1960_v16 = vpack.c.bf16 %v2756_v51, %v2754_v48  ;;  %v2758_v18 = vpop.eup %2757 }
 0x868   :  { %1946 = vadd.xlane.f32.xlu1 %v2754_v48 }
 0x869   :  { %2555 = vmatprep.mubr.bf16.mxu0 %v1960_v16 }
 0x86a   :  { %v2760_v17 = vpop.eup %2759 }
 0x86b   :  { %1948 = vadd.xlane.f32.xlu0 %v2756_v51  ;;  %v1961_v0 = vpack.c.bf16 %v2760_v17, %v2758_v18 }
 0x86c   :  { %1950 = vadd.xlane.f32.xlu1 %v2758_v18 }
 0x86d   :  { %2556 = vmatmul.mubr.bf16.gmra.mrb[92].mxu0 %v1961_v0 }
 0x86f   :  { %1952 = vadd.xlane.f32.xlu0 %v2760_v17 }
 0x8d0   :  { %v1927_v19 = vpop.xlane.xlu1 %1926 }
 0x8d1   :  { %2761 = vrcp.f32 %v1927_v19 }
 0x8d4   :  { %v1929_v30 = vpop.xlane.xlu0 %1928  ;;  %v1923_v3 = vpop.xlane.xlu1 %1922 }
 0x8d5   :  { %2763 = vrcp.f32 %v1923_v3 }
 0x8d6   :  { %2765 = vrcp.f32 %v1929_v30 }
 0x8d8   :  { %v1925_v47 = vpop.xlane.xlu0 %1924 }
 0x8d9   :  { %2767 = vrcp.f32 %v1925_v47 }
 0x8db   :  { %v2762_v12 = vpop.eup %2761 }
 0x8df   :  { %v2764_v49 = vpop.eup %2763 }
 0x8e0   :  { %v1935_v26 = vpop.xlane.xlu1 %1934  ;;  %v2766_v32 = vpop.eup %2765 }
 0x8e1   :  { %2769 = vrcp.f32 %v1935_v26 }
 0x8e3   :  { %v2768_v36 = vpop.eup %2767 }
 0x8e4   :  { %v1931_v63 = vpop.xlane.xlu1 %1930 }
 0x8e5   :  { %2771 = vrcp.f32 %v1931_v63 }
 0x8e8   :  { %v1937_v31 = vpop.xlane.xlu0 %1936 }
 0x8e9   :  { %2773 = vrcp.f32 %v1937_v31 }
 0x8eb   :  { %v2770_v4 = vpop.eup %2769 }
 0x8ec   :  { %v1933_v8 = vpop.xlane.xlu0 %1932 }
 0x8ed   :  { %v1943_v5 = vpop.xlane.xlu1 %1942  ;;  %2775 = vrcp.f32 %v1933_v8 }
 0x8ee   :  { %2777 = vrcp.f32 %v1943_v5 }
 0x8ef   :  { %v2772_v57 = vpop.eup %2771 }
 0x8f0   :  { %v1945_v6 = vpop.xlane.xlu0 %1944 }
 0x8f1   :  { %v1939_v14 = vpop.xlane.xlu1 %1938 }
 0x8f2   :  { %2779 = vrcp.f32 %v1939_v14 }
 0x8f3   :  { %2781 = vrcp.f32 %v1945_v6  ;;  %v2774_v20 = vpop.eup %2773 }
 0x8f4   :  { %v1941_v38 = vpop.xlane.xlu0 %1940 }
 0x8f5   :  { %v1947_v45 = vpop.xlane.xlu1 %1946  ;;  %2783 = vrcp.f32 %v1941_v38 }
 0x8f7   :  { %v2776_v59 = vpop.eup %2775 }
 0x8f8   :  { %v1949_v43 = vpop.xlane.xlu0 %1948  ;;  %v2778_v10 = vpop.eup %2777 }
 0x8f9   :  { %v1951_v60 = vpop.xlane.xlu1 %1950 }
 0x8fa   :  { %2785 = vrcp.f32 %v1951_v60 }
 0x8fb   :  { %2787 = vrcp.f32 %v1947_v45 }
 0x8fc   :  { %v1953_v7 = vpop.xlane.xlu0 %1952  ;;  %v2780_v13 = vpop.eup %2779 }
 0x8fd   :  { %2789 = vrcp.f32 %v1953_v7  ;;  %v2782_v50 = vpop.eup %2781 }
 0x8fe   :  { %2791 = vrcp.f32 %v1949_v43 }
 0x8ff   :  { %v2784_v44 = vpop.eup %2783 }
 0x904   :  { %v2786_v30 = vpop.eup %2785 }
 0x905   :  { %v2788_v47 = vpop.eup %2787 }
 0x91c   :  { %v2545_v25 = vpop.f32.mrb[80].mxu0 }
 0x91d   :  { %v2085_v27 = vmul.f32 %v2762_v12, %v2545_v25  ;;  %v2004_v34 = vpop.f32.mrb[81].mxu0  ;;  %v2790_v12 = vpop.eup %2789 }
 0x91e   :  { %v2083_v35 = vmul.f32 %v2764_v49, %v2004_v34  ;;  %v2546_v28 = vpop.f32.mrb[82].mxu0  ;;  %v2792_v49 = vpop.eup %2791 }
 0x91f   :  { %v2108_v52 = vadd.f32 %v3567_v61, %v2085_v27  ;;  %v2086_v54 = vmul.f32 %v2766_v32, %v2546_v28  ;;  %v2007_v22 = vpop.f32.mrb[83].mxu0 }
 0x920   :  { %v2106_v1 = vadd.f32 %v3567_v61, %v2083_v35  ;;  %v2084_v40 = vmul.f32 %v2768_v36, %v2007_v22 }
 0x921   :  { %2124 = vst [vmem:[#allocation11 + $0x10] sm:$0xff] %v2108_v52  ;;  %v2109_v46 = vadd.f32 %v3567_v61, %v2086_v54 }
 0x922   :  { %2122 = vst [vmem:[#allocation11] sm:$0xff] %v2106_v1  ;;  %v2107_v29 = vadd.f32 %v3567_v61, %v2084_v40 }
 0x923   :  { %2125 = vst [vmem:[#allocation11 + $0x18] sm:$0xff] %v2109_v46 }
 0x924   :  { %2123 = vst [vmem:[#allocation11 + $0x8] sm:$0xff] %v2107_v29 }
 0x930   :  { %v2549_v55 = vpop.f32.mrb[84].mxu0 }
 0x931   :  { %v2089_v42 = vmul.f32 %v2770_v4, %v2549_v55  ;;  %v2020_v39 = vpop.f32.mrb[85].mxu0 }
 0x932   :  { %v2087_v58 = vmul.f32 %v2772_v57, %v2020_v39  ;;  %v2550_v41 = vpop.f32.mrb[86].mxu0 }
 0x933   :  { %v2112_v53 = vadd.f32 %v3567_v61, %v2089_v42  ;;  %v2090_v62 = vmul.f32 %v2774_v20, %v2550_v41  ;;  %v2023_v2 = vpop.f32.mrb[87].mxu0 }
 0x934   :  { %v2110_v37 = vadd.f32 %v3567_v61, %v2087_v58  ;;  %v2088_v56 = vmul.f32 %v2776_v59, %v2023_v2 }
 0x935   :  { %2128 = vst [vmem:[#allocation11 + $0x30] sm:$0xff] %v2112_v53  ;;  %v2113_v15 = vadd.f32 %v3567_v61, %v2090_v62 }
 0x936   :  { %2126 = vst [vmem:[#allocation11 + $0x20] sm:$0xff] %v2110_v37  ;;  %v2111_v9 = vadd.f32 %v3567_v61, %v2088_v56 }
 0x937   :  { %2129 = vst [vmem:[#allocation11 + $0x38] sm:$0xff] %v2113_v15 }
 0x938   :  { %2127 = vst [vmem:[#allocation11 + $0x28] sm:$0xff] %v2111_v9  ;;  %v2553_v23 = vpop.f32.mrb[88].mxu0 }
 0x939   :  { %v2093_v33 = vmul.f32 %v2778_v10, %v2553_v23  ;;  %v2036_v11 = vpop.f32.mrb[89].mxu0 }
 0x93a   :  { %v2091_v24 = vmul.f32 %v2780_v13, %v2036_v11  ;;  %v2554_v21 = vpop.f32.mrb[90].mxu0 }
 0x93b   :  { %v2116_v48 = vadd.f32 %v3567_v61, %v2093_v33  ;;  %v2094_v51 = vmul.f32 %v2782_v50, %v2554_v21  ;;  %v2039_v16 = vpop.f32.mrb[91].mxu0 }
 0x93c   :  { %v2114_v18 = vadd.f32 %v3567_v61, %v2091_v24  ;;  %v2092_v17 = vmul.f32 %v2784_v44, %v2039_v16 }
 0x93d   :  { %2132 = vst [vmem:[#allocation11 + $0x50] sm:$0xff] %v2116_v48  ;;  %v2117_v0 = vadd.f32 %v3567_v61, %v2094_v51 }
 0x93e   :  { %2130 = vst [vmem:[#allocation11 + $0x40] sm:$0xff] %v2114_v18  ;;  %v2115_v19 = vadd.f32 %v3567_v61, %v2092_v17 }
 0x93f   :  { %2133 = vst [vmem:[#allocation11 + $0x58] sm:$0xff] %v2117_v0 }
 0x940   :  { %2131 = vst [vmem:[#allocation11 + $0x48] sm:$0xff] %v2115_v19  ;;  %v2557_v3 = vpop.f32.mrb[92].mxu0 }
 0x941   :  { %v2097_v26 = vmul.f32 %v2786_v30, %v2557_v3  ;;  %v2052_v31 = vpop.f32.mrb[93].mxu0 }
 0x942   :  { %v2095_v63 = vmul.f32 %v2788_v47, %v2052_v31  ;;  %v2558_v25 = vpop.f32.mrb[94].mxu0 }
 0x943   :  { %v2120_v8 = vadd.f32 %v3567_v61, %v2097_v26  ;;  %v2098_v27 = vmul.f32 %v2790_v12, %v2558_v25  ;;  %v2055_v34 = vpop.f32.mrb[95].mxu0 }
 0x944   :  { %v2118_v32 = vadd.f32 %v3567_v61, %v2095_v63  ;;  %v2096_v35 = vmul.f32 %v2792_v49, %v2055_v34 }
 0x945   :  { %2136 = vst [vmem:[#allocation11 + $0x70] sm:$0xff] %v2120_v8  ;;  %v2121_v28 = vadd.f32 %v3567_v61, %v2098_v27 }
 0x946   :  { %2134 = vst [vmem:[#allocation11 + $0x60] sm:$0xff] %v2118_v32  ;;  %v2119_v36 = vadd.f32 %v3567_v61, %v2096_v35 }
 0x947   :  { %2137 = vst [vmem:[#allocation11 + $0x78] sm:$0xff] %v2121_v28 }
 0x948   :  { %2135 = vst [vmem:[#allocation11 + $0x68] sm:$0xff] %v2119_v36 }
 0x949   :  { %2914 = shalt.err (!%p2911_p2)
}
 0x94a   :  { %s2915_s17 = scalar_lea.hbm %s3611_s11, 2048 }
 0x94b   :  { %p2916_p3 = scmp.ne.s32.totalorder %s3611_s11, %s2915_s17  ;;  %p2919_p4 = scmp.lt.u32.totalorder %s2915_s17, %s3611_s11 }
 0x94d   :  { %p2921_p5 = pnand %p2919_p4, %p2916_p3 }
 0x94f   :  { %2924 = shalt.err (!%p2921_p5)
}
 0x950   :  { %2149 = dma.vmem_to_hbm [thread:$0]  %s2144_s14, 2048, %s3611_s11, [#allocation4], %s2934_s27, %s2934_s27, %s2935_s28  }
 0x951   :  { %2931 = dma.done.wait [#allocation4], 2048  }
 0x952   :  { %2932 = vsyncadd [#allocation4], 4294965248 }
 0x953   :  { %2153 = vsyncpa [#allocation3], 1 }
 0x954   :  { %2154 = vsyncpa [#allocation6], 1 }
 0x955   :  { %2155 = vsyncpa [#allocation9], 1 }
 0x956   :  { %2156 = vsyncpa [#allocation4], 1 }

</bundles_post_ra>
